<compile_context>
chip_gen: v6e
topology: v6e:2x2x1
jax: 0.10.0
libtpu: 0.0.40
codegen_flags: <defaults>
</compile_context>

<pallas_src>
import math
import functools

import jax
import jax.numpy as jnp
from jax.experimental import pallas as pl
from jax.experimental.pallas import tpu as pltpu


# ------------------------------------------------------------------ config ---

CFG = dict(
    vocab_size=100,
    max_position=16,
    type_vocab=2,
    hidden=32,
    heads=4,
    intermediate=64,
    layers=2,
    output_dim=16,
)


# ------------------------------------------------------------ fused kernel ---

def _encoder_kernel(emb_ref, mask2d_ref, embg_ref, embb_ref,
                    wqkv_ref, bqkv_ref, wo_ref, bo_ref,
                    ln1g_ref, ln1b_ref, wi_ref, bi_ref, wf_ref, bf_ref,
                    ln2g_ref, ln2b_ref, fcw_ref, fcb_ref,
                    o_ref, *, B, S, H, nh, L):
    """Whole BERT-style encoder forward in one kernel.

    emb_ref    : (B*S, H)      summed word+pos+type embeddings (pre-LayerNorm)
    mask2d_ref : (B*S, B*S)    additive attention mask (block-diag + padding)
    o_ref      : (B, OD)       fc(cls_token)
    """
    dh = H // nh
    scale = 1.0 / math.sqrt(dh)

    def layer_norm(x, g, b):
        # BERT convention: eps = 1e-12, f32 math.
        mu = jnp.mean(x, axis=-1, keepdims=True)
        var = jnp.mean((x - mu) ** 2, axis=-1, keepdims=True)
        return (x - mu) * jax.lax.rsqrt(var + 1e-12) * g + b

    mask2d = mask2d_ref[...]                               # (B*S, B*S)

    # --- embedding LayerNorm (fused) ---
    x = layer_norm(emb_ref[...].astype(jnp.float32),
                   embg_ref[...], embb_ref[...])           # (B*S, H)

    # --- transformer layers (unrolled; weights stacked along leading L axis) ---
    for l in range(L):
        # fused QKV projection: one (B*S, H) x (H, 3H) matmul
        qkv = (jnp.dot(x, wqkv_ref[l], preferred_element_type=jnp.float32)
               + bqkv_ref[l])                              # (B*S, 3H)

        # masked multi-head attention — pure 2D matmuls per head
        ctx_heads = []
        for h in range(nh):
            qh = qkv[:, h * dh:(h + 1) * dh] * scale               # (B*S, dh)
            kh = qkv[:, H + h * dh:H + (h + 1) * dh]               # (B*S, dh)
            vh = qkv[:, 2 * H + h * dh:2 * H + (h + 1) * dh]       # (B*S, dh)
            s = jnp.dot(qh, kh.T, preferred_element_type=jnp.float32) + mask2d
            s = s - jnp.max(s, axis=-1, keepdims=True)
            p = jnp.exp(s)
            p = p * pl.reciprocal(jnp.sum(p, axis=-1, keepdims=True), approx=True)
            ctx_heads.append(jnp.dot(p, vh, preferred_element_type=jnp.float32))
        ctx = jnp.concatenate(ctx_heads, axis=-1)          # (B*S, H)

        # output projection + fused residual + LayerNorm (post-LN)
        attn_out = (jnp.dot(ctx, wo_ref[l], preferred_element_type=jnp.float32)
                    + bo_ref[l])
        x = layer_norm(x + attn_out, ln1g_ref[l], ln1b_ref[l])

        # FFN with GELU + fused residual + LayerNorm
        inter = (jnp.dot(x, wi_ref[l], preferred_element_type=jnp.float32)
                 + bi_ref[l])
        # TODO(synk): HF BERT default is erf-GELU; tanh-approx GELU used here (TPU/EUP-friendly).
        inter = 0.5 * inter * (1.0 + jnp.tanh(
            0.7978845608028654 * (inter + 0.044715 * inter * inter * inter)))
        ffn = (jnp.dot(inter, wf_ref[l], preferred_element_type=jnp.float32)
               + bf_ref[l])
        x = layer_norm(x + ffn, ln2g_ref[l], ln2b_ref[l])

    # --- CLS pooling + fc projection (fused epilogue) ---
    cls = x.reshape(B, S, H)[:, 0, :]                      # (B, H)
    out = (jnp.dot(cls, fcw_ref[...], preferred_element_type=jnp.float32)
           + fcb_ref[...])
    o_ref[...] = out.astype(o_ref.dtype)


# --------------------------------------------------------------- parameters ---

def init_params(key, cfg):
    H, I, V = cfg["hidden"], cfg["intermediate"], cfg["vocab_size"]
    L, OD = cfg["layers"], cfg["output_dim"]

    def nrm(k, shape, std=0.02):
        return (std * jax.random.normal(k, shape)).astype(jnp.float32)

    keys = iter(jax.random.split(key, 32))
    return dict(
        word_emb=nrm(next(keys), (V, H)),
        pos_emb=nrm(next(keys), (cfg["max_position"], H)),
        type_emb=nrm(next(keys), (cfg["type_vocab"], H)),
        emb_ln_g=jnp.ones((1, H), jnp.float32),
        emb_ln_b=jnp.zeros((1, H), jnp.float32),
        # per-layer weights stacked along leading L axis; Q/K/V fused into (H, 3H)
        wqkv=nrm(next(keys), (L, H, 3 * H)),
        bqkv=jnp.zeros((L, 1, 3 * H), jnp.float32),
        wo=nrm(next(keys), (L, H, H)),
        bo=jnp.zeros((L, 1, H), jnp.float32),
        ln1_g=jnp.ones((L, 1, H), jnp.float32),
        ln1_b=jnp.zeros((L, 1, H), jnp.float32),
        wi=nrm(next(keys), (L, H, I)),
        bi=jnp.zeros((L, 1, I), jnp.float32),
        wf=nrm(next(keys), (L, I, H)),
        bf=jnp.zeros((L, 1, H), jnp.float32),
        ln2_g=jnp.ones((L, 1, H), jnp.float32),
        ln2_b=jnp.zeros((L, 1, H), jnp.float32),
        fc_w=nrm(next(keys), (H, OD)),
        fc_b=jnp.zeros((1, OD), jnp.float32),
    )


# ------------------------------------------------------------------ forward ---

def _full_spec(shape):
    ndim = len(shape)

    def idx(i):  # grid=(1,): always block (0, ..., 0)
        return (0,) * ndim

    return pl.BlockSpec(shape, idx)


def siamese_encoder_forward(params, input_ids, attention_mask, cfg=CFG):
    B, S = input_ids.shape
    H, nh, L = cfg["hidden"], cfg["heads"], cfg["layers"]
    I, OD = cfg["intermediate"], cfg["output_dim"]
    BS = B * S

    # --- embeddings: gather + add is plain-JAX glue feeding the fused kernel ---
    emb = (params["word_emb"][input_ids]
           + params["pos_emb"][:S][None, :, :]
           + params["type_emb"][0][None, None, :]).reshape(BS, H).astype(jnp.float32)

    # Combined additive attention mask over flattened tokens:
    #   within-batch padding keys: (1 - mask) * -10000  (BERT convention)
    #   cross-batch pairs:         -1e9 (never attended; keeps attention 2D in-kernel)
    key_mask = (1.0 - attention_mask.astype(jnp.float32).reshape(-1)) * -10000.0  # (BS,)
    batch_ids = jnp.arange(BS, dtype=jnp.int32) // S
    same_batch = batch_ids[:, None] == batch_ids[None, :]
    mask2d = jnp.where(same_batch, key_mask[None, :], -1e9).astype(jnp.float32)   # (BS, BS)

    kernel = functools.partial(_encoder_kernel, B=B, S=S, H=H, nh=nh, L=L)

    return pl.pallas_call(
        kernel,
        out_shape=jax.ShapeDtypeStruct((B, OD), jnp.float32),
        grid=(1,),
        in_specs=[
            _full_spec((BS, H)),                            # emb
            _full_spec((BS, BS)),                           # additive mask
            _full_spec((1, H)), _full_spec((1, H)),         # embedding LN gamma / beta
            _full_spec((L, H, 3 * H)), _full_spec((L, 1, 3 * H)),   # fused QKV
            _full_spec((L, H, H)), _full_spec((L, 1, H)),           # attn output proj
            _full_spec((L, 1, H)), _full_spec((L, 1, H)),           # LN1
            _full_spec((L, H, I)), _full_spec((L, 1, I)),           # FFN in
            _full_spec((L, I, H)), _full_spec((L, 1, H)),           # FFN out
            _full_spec((L, 1, H)), _full_spec((L, 1, H)),           # LN2
            _full_spec((H, OD)), _full_spec((1, OD)),               # fc
        ],
        out_specs=_full_spec((B, OD)),
        compiler_params=pltpu.CompilerParams(
            dimension_semantics=("arbitrary",)),
    )(emb, mask2d, params["emb_ln_g"], params["emb_ln_b"],
      params["wqkv"], params["bqkv"], params["wo"], params["bo"],
      params["ln1_g"], params["ln1_b"], params["wi"], params["bi"],
      params["wf"], params["bf"], params["ln2_g"], params["ln2_b"],
      params["fc_w"], params["fc_b"])


# --------------------------------------------------------------------- main ---

if __name__ == "__main__":
    key = jax.random.PRNGKey(0)
    k_param, k_ids = jax.random.split(key)

    B, S = 2, 8
    params = init_params(k_param, CFG)
    input_ids = jax.random.randint(k_ids, (B, S), 0, CFG["vocab_size"], dtype=jnp.int32)
    attention_mask = jnp.array(
        [[1, 1, 1, 1, 1, 1, 1, 1],
         [1, 1, 1, 1, 1, 0, 0, 0]], dtype=jnp.int32)

    fwd = jax.jit(lambda p, ids, m: siamese_encoder_forward(p, ids, m))
    out = jax.block_until_ready(fwd(params, input_ids, attention_mask))

    assert out.shape == (B, CFG["output_dim"]) and out.dtype == jnp.float32
    assert bool(jnp.all(jnp.isfinite(out)))
    print("KERNEL_OK")
</pallas_src>

<mosaic_0001>
module attributes {stable_mosaic.version = 11 : i64} {
  func.func @_encoder_kernel(%arg0: i32, %arg1: memref<16x32xf32, #tpu.memory_space<vmem>>, %arg2: memref<16x16xf32, #tpu.memory_space<vmem>>, %arg3: memref<1x32xf32, #tpu.memory_space<vmem>>, %arg4: memref<1x32xf32, #tpu.memory_space<vmem>>, %arg5: memref<2x32x96xf32, #tpu.memory_space<vmem>>, %arg6: memref<2x1x96xf32, #tpu.memory_space<vmem>>, %arg7: memref<2x32x32xf32, #tpu.memory_space<vmem>>, %arg8: memref<2x1x32xf32, #tpu.memory_space<vmem>>, %arg9: memref<2x1x32xf32, #tpu.memory_space<vmem>>, %arg10: memref<2x1x32xf32, #tpu.memory_space<vmem>>, %arg11: memref<2x32x64xf32, #tpu.memory_space<vmem>>, %arg12: memref<2x1x64xf32, #tpu.memory_space<vmem>>, %arg13: memref<2x64x32xf32, #tpu.memory_space<vmem>>, %arg14: memref<2x1x32xf32, #tpu.memory_space<vmem>>, %arg15: memref<2x1x32xf32, #tpu.memory_space<vmem>>, %arg16: memref<2x1x32xf32, #tpu.memory_space<vmem>>, %arg17: memref<32x16xf32, #tpu.memory_space<vmem>>, %arg18: memref<1x16xf32, #tpu.memory_space<vmem>>, %arg19: memref<2x16xf32, #tpu.memory_space<vmem>>) attributes {dimension_semantics = [#tpu.dimension_semantics<arbitrary>], iteration_bounds = array<i64: 1>, scalar_prefetch = 0 : i64, scratch_operands = 0 : i64, tpu.core_type = #tpu.core_type<tc>, window_params = [{pipeline_mode = #tpu.pipeline_mode<synchronous>, transform_indices = @transform_0, window_bounds = array<i64: 16, 32>}, {pipeline_mode = #tpu.pipeline_mode<synchronous>, transform_indices = @transform_1, window_bounds = array<i64: 16, 16>}, {pipeline_mode = #tpu.pipeline_mode<synchronous>, transform_indices = @transform_2, window_bounds = array<i64: 1, 32>}, {pipeline_mode = #tpu.pipeline_mode<synchronous>, transform_indices = @transform_3, window_bounds = array<i64: 1, 32>}, {pipeline_mode = #tpu.pipeline_mode<synchronous>, transform_indices = @transform_4, window_bounds = array<i64: 2, 32, 96>}, {pipeline_mode = #tpu.pipeline_mode<synchronous>, transform_indices = @transform_5, window_bounds = array<i64: 2, 1, 96>}, {pipeline_mode = #tpu.pipeline_mode<synchronous>, transform_indices = @transform_6, window_bounds = array<i64: 2, 32, 32>}, {pipeline_mode = #tpu.pipeline_mode<synchronous>, transform_indices = @transform_7, window_bounds = array<i64: 2, 1, 32>}, {pipeline_mode = #tpu.pipeline_mode<synchronous>, transform_indices = @transform_8, window_bounds = array<i64: 2, 1, 32>}, {pipeline_mode = #tpu.pipeline_mode<synchronous>, transform_indices = @transform_9, window_bounds = array<i64: 2, 1, 32>}, {pipeline_mode = #tpu.pipeline_mode<synchronous>, transform_indices = @transform_10, window_bounds = array<i64: 2, 32, 64>}, {pipeline_mode = #tpu.pipeline_mode<synchronous>, transform_indices = @transform_11, window_bounds = array<i64: 2, 1, 64>}, {pipeline_mode = #tpu.pipeline_mode<synchronous>, transform_indices = @transform_12, window_bounds = array<i64: 2, 64, 32>}, {pipeline_mode = #tpu.pipeline_mode<synchronous>, transform_indices = @transform_13, window_bounds = array<i64: 2, 1, 32>}, {pipeline_mode = #tpu.pipeline_mode<synchronous>, transform_indices = @transform_14, window_bounds = array<i64: 2, 1, 32>}, {pipeline_mode = #tpu.pipeline_mode<synchronous>, transform_indices = @transform_15, window_bounds = array<i64: 2, 1, 32>}, {pipeline_mode = #tpu.pipeline_mode<synchronous>, transform_indices = @transform_16, window_bounds = array<i64: 32, 16>}, {pipeline_mode = #tpu.pipeline_mode<synchronous>, transform_indices = @transform_17, window_bounds = array<i64: 1, 16>}, {pipeline_mode = #tpu.pipeline_mode<synchronous>, transform_indices = @transform_18, window_bounds = array<i64: 2, 16>}]} {
    %c0 = arith.constant 0 : index
    %c0_0 = arith.constant 0 : index
    %0 = vector.load %arg2[%c0, %c0_0] : memref<16x16xf32, #tpu.memory_space<vmem>>, vector<16x16xf32>
    %c0_1 = arith.constant 0 : index
    %c0_2 = arith.constant 0 : index
    %1 = vector.load %arg1[%c0_1, %c0_2] : memref<16x32xf32, #tpu.memory_space<vmem>>, vector<16x32xf32>
    %c0_3 = arith.constant 0 : index
    %c0_4 = arith.constant 0 : index
    %2 = vector.load %arg3[%c0_3, %c0_4] : memref<1x32xf32, #tpu.memory_space<vmem>>, vector<1x32xf32>
    %c0_5 = arith.constant 0 : index
    %c0_6 = arith.constant 0 : index
    %3 = vector.load %arg4[%c0_5, %c0_6] : memref<1x32xf32, #tpu.memory_space<vmem>>, vector<1x32xf32>
    %cst = arith.constant dense<0.000000e+00> : vector<16xf32>
    %4 = vector.multi_reduction <add>, %1, %cst [1] : vector<16x32xf32> to vector<16xf32>
    %5 = vector.shape_cast %4 : vector<16xf32> to vector<16x1xf32>
    %cst_7 = arith.constant 3.200000e+01 : f32
    %6 = vector.broadcast %cst_7 : f32 to vector<16x1xf32>
    %7 = arith.divf %5, %6 : vector<16x1xf32>
    %8 = vector.broadcast %7 : vector<16x1xf32> to vector<16x32xf32>
    %9 = arith.subf %1, %8 : vector<16x32xf32>
    %10 = arith.mulf %9, %9 : vector<16x32xf32>
    %cst_8 = arith.constant dense<0.000000e+00> : vector<16xf32>
    %11 = vector.multi_reduction <add>, %10, %cst_8 [1] : vector<16x32xf32> to vector<16xf32>
    %12 = vector.shape_cast %11 : vector<16xf32> to vector<16x1xf32>
    %cst_9 = arith.constant 3.200000e+01 : f32
    %13 = vector.broadcast %cst_9 : f32 to vector<16x1xf32>
    %14 = arith.divf %12, %13 : vector<16x1xf32>
    %15 = vector.broadcast %7 : vector<16x1xf32> to vector<16x32xf32>
    %16 = arith.subf %1, %15 : vector<16x32xf32>
    %cst_10 = arith.constant 9.99999996E-13 : f32
    %17 = vector.broadcast %cst_10 : f32 to vector<16x1xf32>
    %18 = arith.addf %14, %17 : vector<16x1xf32>
    %19 = math.rsqrt %18 : vector<16x1xf32>
    %20 = vector.broadcast %19 : vector<16x1xf32> to vector<16x32xf32>
    %21 = arith.mulf %16, %20 : vector<16x32xf32>
    %22 = vector.broadcast %2 : vector<1x32xf32> to vector<16x32xf32>
    %23 = arith.mulf %21, %22 : vector<16x32xf32>
    %24 = vector.broadcast %3 : vector<1x32xf32> to vector<16x32xf32>
    %25 = arith.addf %23, %24 : vector<16x32xf32>
    %c0_11 = arith.constant 0 : index
    %c0_12 = arith.constant 0 : index
    %c0_13 = arith.constant 0 : index
    %26 = vector.load %arg5[%c0_11, %c0_12, %c0_13] : memref<2x32x96xf32, #tpu.memory_space<vmem>>, vector<1x32x96xf32>
    %27 = vector.shape_cast %26 : vector<1x32x96xf32> to vector<32x96xf32>
    %cst_14 = arith.constant dense<0.000000e+00> : vector<16x96xf32>
    %28 = tpu.matmul %25, %27, %cst_14 {dimension_numbers = #tpu.dot_dimension_numbers<[1], [0], [0], [1], [0, 0, 1, 1], [], []>} : vector<16x32xf32>, vector<32x96xf32>, vector<16x96xf32> -> vector<16x96xf32>
    %c0_15 = arith.constant 0 : index
    %c0_16 = arith.constant 0 : index
    %c0_17 = arith.constant 0 : index
    %29 = vector.load %arg6[%c0_15, %c0_16, %c0_17] : memref<2x1x96xf32, #tpu.memory_space<vmem>>, vector<1x1x96xf32>
    %30 = vector.shape_cast %29 : vector<1x1x96xf32> to vector<1x96xf32>
    %31 = vector.broadcast %30 : vector<1x96xf32> to vector<16x96xf32>
    %32 = arith.addf %28, %31 : vector<16x96xf32>
    %33 = vector.extract_strided_slice %32 {offsets = [0, 0], sizes = [16, 8], strides = [1, 1]} : vector<16x96xf32> to vector<16x8xf32>
    %cst_18 = arith.constant 0.353553385 : f32
    %34 = vector.broadcast %cst_18 : f32 to vector<16x8xf32>
    %35 = arith.mulf %33, %34 : vector<16x8xf32>
    %36 = vector.extract_strided_slice %32 {offsets = [0, 32], sizes = [16, 8], strides = [1, 1]} : vector<16x96xf32> to vector<16x8xf32>
    %37 = vector.extract_strided_slice %32 {offsets = [0, 64], sizes = [16, 8], strides = [1, 1]} : vector<16x96xf32> to vector<16x8xf32>
    %38 = tpu.transpose %36, [1, 0] : vector<16x8xf32> -> vector<8x16xf32>
    %cst_19 = arith.constant dense<0.000000e+00> : vector<16x16xf32>
    %39 = tpu.matmul %35, %38, %cst_19 {dimension_numbers = #tpu.dot_dimension_numbers<[1], [0], [0], [1], [0, 0, 1, 1], [], []>} : vector<16x8xf32>, vector<8x16xf32>, vector<16x16xf32> -> vector<16x16xf32>
    %40 = arith.addf %39, %0 : vector<16x16xf32>
    %cst_20 = arith.constant dense<0xFF800000> : vector<16xf32>
    %41 = vector.multi_reduction <maximumf>, %40, %cst_20 [1] : vector<16x16xf32> to vector<16xf32>
    %42 = vector.shape_cast %41 : vector<16xf32> to vector<16x1xf32>
    %43 = vector.broadcast %42 : vector<16x1xf32> to vector<16x16xf32>
    %44 = arith.subf %40, %43 : vector<16x16xf32>
    %45 = math.exp %44 : vector<16x16xf32>
    %cst_21 = arith.constant dense<0.000000e+00> : vector<16xf32>
    %46 = vector.multi_reduction <add>, %45, %cst_21 [1] : vector<16x16xf32> to vector<16xf32>
    %47 = vector.shape_cast %46 : vector<16xf32> to vector<16x1xf32>
    %48 = tpu.reciprocal %47 {approx = true} : vector<16x1xf32> -> vector<16x1xf32>
    %49 = vector.broadcast %48 : vector<16x1xf32> to vector<16x16xf32>
    %50 = arith.mulf %45, %49 : vector<16x16xf32>
    %cst_22 = arith.constant dense<0.000000e+00> : vector<16x8xf32>
    %51 = tpu.matmul %50, %37, %cst_22 {dimension_numbers = #tpu.dot_dimension_numbers<[1], [0], [0], [1], [0, 0, 1, 1], [], []>} : vector<16x16xf32>, vector<16x8xf32>, vector<16x8xf32> -> vector<16x8xf32>
    %52 = vector.extract_strided_slice %32 {offsets = [0, 8], sizes = [16, 8], strides = [1, 1]} : vector<16x96xf32> to vector<16x8xf32>
    %cst_23 = arith.constant 0.353553385 : f32
    %53 = vector.broadcast %cst_23 : f32 to vector<16x8xf32>
    %54 = arith.mulf %52, %53 : vector<16x8xf32>
    %55 = vector.extract_strided_slice %32 {offsets = [0, 40], sizes = [16, 8], strides = [1, 1]} : vector<16x96xf32> to vector<16x8xf32>
    %56 = vector.extract_strided_slice %32 {offsets = [0, 72], sizes = [16, 8], strides = [1, 1]} : vector<16x96xf32> to vector<16x8xf32>
    %57 = tpu.transpose %55, [1, 0] : vector<16x8xf32> -> vector<8x16xf32>
    %cst_24 = arith.constant dense<0.000000e+00> : vector<16x16xf32>
    %58 = tpu.matmul %54, %57, %cst_24 {dimension_numbers = #tpu.dot_dimension_numbers<[1], [0], [0], [1], [0, 0, 1, 1], [], []>} : vector<16x8xf32>, vector<8x16xf32>, vector<16x16xf32> -> vector<16x16xf32>
    %59 = arith.addf %58, %0 : vector<16x16xf32>
    %cst_25 = arith.constant dense<0xFF800000> : vector<16xf32>
    %60 = vector.multi_reduction <maximumf>, %59, %cst_25 [1] : vector<16x16xf32> to vector<16xf32>
    %61 = vector.shape_cast %60 : vector<16xf32> to vector<16x1xf32>
    %62 = vector.broadcast %61 : vector<16x1xf32> to vector<16x16xf32>
    %63 = arith.subf %59, %62 : vector<16x16xf32>
    %64 = math.exp %63 : vector<16x16xf32>
    %cst_26 = arith.constant dense<0.000000e+00> : vector<16xf32>
    %65 = vector.multi_reduction <add>, %64, %cst_26 [1] : vector<16x16xf32> to vector<16xf32>
    %66 = vector.shape_cast %65 : vector<16xf32> to vector<16x1xf32>
    %67 = tpu.reciprocal %66 {approx = true} : vector<16x1xf32> -> vector<16x1xf32>
    %68 = vector.broadcast %67 : vector<16x1xf32> to vector<16x16xf32>
    %69 = arith.mulf %64, %68 : vector<16x16xf32>
    %cst_27 = arith.constant dense<0.000000e+00> : vector<16x8xf32>
    %70 = tpu.matmul %69, %56, %cst_27 {dimension_numbers = #tpu.dot_dimension_numbers<[1], [0], [0], [1], [0, 0, 1, 1], [], []>} : vector<16x16xf32>, vector<16x8xf32>, vector<16x8xf32> -> vector<16x8xf32>
    %71 = vector.extract_strided_slice %32 {offsets = [0, 16], sizes = [16, 8], strides = [1, 1]} : vector<16x96xf32> to vector<16x8xf32>
    %cst_28 = arith.constant 0.353553385 : f32
    %72 = vector.broadcast %cst_28 : f32 to vector<16x8xf32>
    %73 = arith.mulf %71, %72 : vector<16x8xf32>
    %74 = vector.extract_strided_slice %32 {offsets = [0, 48], sizes = [16, 8], strides = [1, 1]} : vector<16x96xf32> to vector<16x8xf32>
    %75 = vector.extract_strided_slice %32 {offsets = [0, 80], sizes = [16, 8], strides = [1, 1]} : vector<16x96xf32> to vector<16x8xf32>
    %76 = tpu.transpose %74, [1, 0] : vector<16x8xf32> -> vector<8x16xf32>
    %cst_29 = arith.constant dense<0.000000e+00> : vector<16x16xf32>
    %77 = tpu.matmul %73, %76, %cst_29 {dimension_numbers = #tpu.dot_dimension_numbers<[1], [0], [0], [1], [0, 0, 1, 1], [], []>} : vector<16x8xf32>, vector<8x16xf32>, vector<16x16xf32> -> vector<16x16xf32>
    %78 = arith.addf %77, %0 : vector<16x16xf32>
    %cst_30 = arith.constant dense<0xFF800000> : vector<16xf32>
    %79 = vector.multi_reduction <maximumf>, %78, %cst_30 [1] : vector<16x16xf32> to vector<16xf32>
    %80 = vector.shape_cast %79 : vector<16xf32> to vector<16x1xf32>
    %81 = vector.broadcast %80 : vector<16x1xf32> to vector<16x16xf32>
    %82 = arith.subf %78, %81 : vector<16x16xf32>
    %83 = math.exp %82 : vector<16x16xf32>
    %cst_31 = arith.constant dense<0.000000e+00> : vector<16xf32>
    %84 = vector.multi_reduction <add>, %83, %cst_31 [1] : vector<16x16xf32> to vector<16xf32>
    %85 = vector.shape_cast %84 : vector<16xf32> to vector<16x1xf32>
    %86 = tpu.reciprocal %85 {approx = true} : vector<16x1xf32> -> vector<16x1xf32>
    %87 = vector.broadcast %86 : vector<16x1xf32> to vector<16x16xf32>
    %88 = arith.mulf %83, %87 : vector<16x16xf32>
    %cst_32 = arith.constant dense<0.000000e+00> : vector<16x8xf32>
    %89 = tpu.matmul %88, %75, %cst_32 {dimension_numbers = #tpu.dot_dimension_numbers<[1], [0], [0], [1], [0, 0, 1, 1], [], []>} : vector<16x16xf32>, vector<16x8xf32>, vector<16x8xf32> -> vector<16x8xf32>
    %90 = vector.extract_strided_slice %32 {offsets = [0, 24], sizes = [16, 8], strides = [1, 1]} : vector<16x96xf32> to vector<16x8xf32>
    %cst_33 = arith.constant 0.353553385 : f32
    %91 = vector.broadcast %cst_33 : f32 to vector<16x8xf32>
    %92 = arith.mulf %90, %91 : vector<16x8xf32>
    %93 = vector.extract_strided_slice %32 {offsets = [0, 56], sizes = [16, 8], strides = [1, 1]} : vector<16x96xf32> to vector<16x8xf32>
    %94 = vector.extract_strided_slice %32 {offsets = [0, 88], sizes = [16, 8], strides = [1, 1]} : vector<16x96xf32> to vector<16x8xf32>
    %95 = tpu.transpose %93, [1, 0] : vector<16x8xf32> -> vector<8x16xf32>
    %cst_34 = arith.constant dense<0.000000e+00> : vector<16x16xf32>
    %96 = tpu.matmul %92, %95, %cst_34 {dimension_numbers = #tpu.dot_dimension_numbers<[1], [0], [0], [1], [0, 0, 1, 1], [], []>} : vector<16x8xf32>, vector<8x16xf32>, vector<16x16xf32> -> vector<16x16xf32>
    %97 = arith.addf %96, %0 : vector<16x16xf32>
    %cst_35 = arith.constant dense<0xFF800000> : vector<16xf32>
    %98 = vector.multi_reduction <maximumf>, %97, %cst_35 [1] : vector<16x16xf32> to vector<16xf32>
    %99 = vector.shape_cast %98 : vector<16xf32> to vector<16x1xf32>
    %100 = vector.broadcast %99 : vector<16x1xf32> to vector<16x16xf32>
    %101 = arith.subf %97, %100 : vector<16x16xf32>
    %102 = math.exp %101 : vector<16x16xf32>
    %cst_36 = arith.constant dense<0.000000e+00> : vector<16xf32>
    %103 = vector.multi_reduction <add>, %102, %cst_36 [1] : vector<16x16xf32> to vector<16xf32>
    %104 = vector.shape_cast %103 : vector<16xf32> to vector<16x1xf32>
    %105 = tpu.reciprocal %104 {approx = true} : vector<16x1xf32> -> vector<16x1xf32>
    %106 = vector.broadcast %105 : vector<16x1xf32> to vector<16x16xf32>
    %107 = arith.mulf %102, %106 : vector<16x16xf32>
    %cst_37 = arith.constant dense<0.000000e+00> : vector<16x8xf32>
    %108 = tpu.matmul %107, %94, %cst_37 {dimension_numbers = #tpu.dot_dimension_numbers<[1], [0], [0], [1], [0, 0, 1, 1], [], []>} : vector<16x16xf32>, vector<16x8xf32>, vector<16x8xf32> -> vector<16x8xf32>
    %109 = tpu.concatenate %51, %70, %89, %108 in 1 : vector<16x8xf32>, vector<16x8xf32>, vector<16x8xf32>, vector<16x8xf32> -> vector<16x32xf32>
    %c0_38 = arith.constant 0 : index
    %c0_39 = arith.constant 0 : index
    %c0_40 = arith.constant 0 : index
    %110 = vector.load %arg7[%c0_38, %c0_39, %c0_40] : memref<2x32x32xf32, #tpu.memory_space<vmem>>, vector<1x32x32xf32>
    %111 = vector.shape_cast %110 : vector<1x32x32xf32> to vector<32x32xf32>
    %cst_41 = arith.constant dense<0.000000e+00> : vector<16x32xf32>
    %112 = tpu.matmul %109, %111, %cst_41 {dimension_numbers = #tpu.dot_dimension_numbers<[1], [0], [0], [1], [0, 0, 1, 1], [], []>} : vector<16x32xf32>, vector<32x32xf32>, vector<16x32xf32> -> vector<16x32xf32>
    %c0_42 = arith.constant 0 : index
    %c0_43 = arith.constant 0 : index
    %c0_44 = arith.constant 0 : index
    %113 = vector.load %arg8[%c0_42, %c0_43, %c0_44] : memref<2x1x32xf32, #tpu.memory_space<vmem>>, vector<1x1x32xf32>
    %114 = vector.shape_cast %113 : vector<1x1x32xf32> to vector<1x32xf32>
    %115 = vector.broadcast %114 : vector<1x32xf32> to vector<16x32xf32>
    %116 = arith.addf %112, %115 : vector<16x32xf32>
    %117 = arith.addf %25, %116 : vector<16x32xf32>
    %c0_45 = arith.constant 0 : index
    %c0_46 = arith.constant 0 : index
    %c0_47 = arith.constant 0 : index
    %118 = vector.load %arg9[%c0_45, %c0_46, %c0_47] : memref<2x1x32xf32, #tpu.memory_space<vmem>>, vector<1x1x32xf32>
    %119 = vector.shape_cast %118 : vector<1x1x32xf32> to vector<1x32xf32>
    %c0_48 = arith.constant 0 : index
    %c0_49 = arith.constant 0 : index
    %c0_50 = arith.constant 0 : index
    %120 = vector.load %arg10[%c0_48, %c0_49, %c0_50] : memref<2x1x32xf32, #tpu.memory_space<vmem>>, vector<1x1x32xf32>
    %121 = vector.shape_cast %120 : vector<1x1x32xf32> to vector<1x32xf32>
    %cst_51 = arith.constant dense<0.000000e+00> : vector<16xf32>
    %122 = vector.multi_reduction <add>, %117, %cst_51 [1] : vector<16x32xf32> to vector<16xf32>
    %123 = vector.shape_cast %122 : vector<16xf32> to vector<16x1xf32>
    %cst_52 = arith.constant 3.200000e+01 : f32
    %124 = vector.broadcast %cst_52 : f32 to vector<16x1xf32>
    %125 = arith.divf %123, %124 : vector<16x1xf32>
    %126 = vector.broadcast %125 : vector<16x1xf32> to vector<16x32xf32>
    %127 = arith.subf %117, %126 : vector<16x32xf32>
    %128 = arith.mulf %127, %127 : vector<16x32xf32>
    %cst_53 = arith.constant dense<0.000000e+00> : vector<16xf32>
    %129 = vector.multi_reduction <add>, %128, %cst_53 [1] : vector<16x32xf32> to vector<16xf32>
    %130 = vector.shape_cast %129 : vector<16xf32> to vector<16x1xf32>
    %cst_54 = arith.constant 3.200000e+01 : f32
    %131 = vector.broadcast %cst_54 : f32 to vector<16x1xf32>
    %132 = arith.divf %130, %131 : vector<16x1xf32>
    %133 = vector.broadcast %125 : vector<16x1xf32> to vector<16x32xf32>
    %134 = arith.subf %117, %133 : vector<16x32xf32>
    %cst_55 = arith.constant 9.99999996E-13 : f32
    %135 = vector.broadcast %cst_55 : f32 to vector<16x1xf32>
    %136 = arith.addf %132, %135 : vector<16x1xf32>
    %137 = math.rsqrt %136 : vector<16x1xf32>
    %138 = vector.broadcast %137 : vector<16x1xf32> to vector<16x32xf32>
    %139 = arith.mulf %134, %138 : vector<16x32xf32>
    %140 = vector.broadcast %119 : vector<1x32xf32> to vector<16x32xf32>
    %141 = arith.mulf %139, %140 : vector<16x32xf32>
    %142 = vector.broadcast %121 : vector<1x32xf32> to vector<16x32xf32>
    %143 = arith.addf %141, %142 : vector<16x32xf32>
    %c0_56 = arith.constant 0 : index
    %c0_57 = arith.constant 0 : index
    %c0_58 = arith.constant 0 : index
    %144 = vector.load %arg11[%c0_56, %c0_57, %c0_58] : memref<2x32x64xf32, #tpu.memory_space<vmem>>, vector<1x32x64xf32>
    %145 = vector.shape_cast %144 : vector<1x32x64xf32> to vector<32x64xf32>
    %cst_59 = arith.constant dense<0.000000e+00> : vector<16x64xf32>
    %146 = tpu.matmul %143, %145, %cst_59 {dimension_numbers = #tpu.dot_dimension_numbers<[1], [0], [0], [1], [0, 0, 1, 1], [], []>} : vector<16x32xf32>, vector<32x64xf32>, vector<16x64xf32> -> vector<16x64xf32>
    %c0_60 = arith.constant 0 : index
    %c0_61 = arith.constant 0 : index
    %c0_62 = arith.constant 0 : index
    %147 = vector.load %arg12[%c0_60, %c0_61, %c0_62] : memref<2x1x64xf32, #tpu.memory_space<vmem>>, vector<1x1x64xf32>
    %148 = vector.shape_cast %147 : vector<1x1x64xf32> to vector<1x64xf32>
    %149 = vector.broadcast %148 : vector<1x64xf32> to vector<16x64xf32>
    %150 = arith.addf %146, %149 : vector<16x64xf32>
    %cst_63 = arith.constant 5.000000e-01 : f32
    %151 = vector.broadcast %cst_63 : f32 to vector<16x64xf32>
    %152 = arith.mulf %151, %150 : vector<16x64xf32>
    %cst_64 = arith.constant 4.471500e-02 : f32
    %153 = vector.broadcast %cst_64 : f32 to vector<16x64xf32>
    %154 = arith.mulf %153, %150 : vector<16x64xf32>
    %155 = arith.mulf %154, %150 : vector<16x64xf32>
    %156 = arith.mulf %155, %150 : vector<16x64xf32>
    %157 = arith.addf %150, %156 : vector<16x64xf32>
    %cst_65 = arith.constant 0.797884583 : f32
    %158 = vector.broadcast %cst_65 : f32 to vector<16x64xf32>
    %159 = arith.mulf %158, %157 : vector<16x64xf32>
    %160 = math.tanh %159 : vector<16x64xf32>
    %cst_66 = arith.constant 1.000000e+00 : f32
    %161 = vector.broadcast %cst_66 : f32 to vector<16x64xf32>
    %162 = arith.addf %161, %160 : vector<16x64xf32>
    %163 = arith.mulf %152, %162 : vector<16x64xf32>
    %c0_67 = arith.constant 0 : index
    %c0_68 = arith.constant 0 : index
    %c0_69 = arith.constant 0 : index
    %164 = vector.load %arg13[%c0_67, %c0_68, %c0_69] : memref<2x64x32xf32, #tpu.memory_space<vmem>>, vector<1x64x32xf32>
    %165 = vector.shape_cast %164 : vector<1x64x32xf32> to vector<64x32xf32>
    %cst_70 = arith.constant dense<0.000000e+00> : vector<16x32xf32>
    %166 = tpu.matmul %163, %165, %cst_70 {dimension_numbers = #tpu.dot_dimension_numbers<[1], [0], [0], [1], [0, 0, 1, 1], [], []>} : vector<16x64xf32>, vector<64x32xf32>, vector<16x32xf32> -> vector<16x32xf32>
    %c0_71 = arith.constant 0 : index
    %c0_72 = arith.constant 0 : index
    %c0_73 = arith.constant 0 : index
    %167 = vector.load %arg14[%c0_71, %c0_72, %c0_73] : memref<2x1x32xf32, #tpu.memory_space<vmem>>, vector<1x1x32xf32>
    %168 = vector.shape_cast %167 : vector<1x1x32xf32> to vector<1x32xf32>
    %169 = vector.broadcast %168 : vector<1x32xf32> to vector<16x32xf32>
    %170 = arith.addf %166, %169 : vector<16x32xf32>
    %171 = arith.addf %143, %170 : vector<16x32xf32>
    %c0_74 = arith.constant 0 : index
    %c0_75 = arith.constant 0 : index
    %c0_76 = arith.constant 0 : index
    %172 = vector.load %arg15[%c0_74, %c0_75, %c0_76] : memref<2x1x32xf32, #tpu.memory_space<vmem>>, vector<1x1x32xf32>
    %173 = vector.shape_cast %172 : vector<1x1x32xf32> to vector<1x32xf32>
    %c0_77 = arith.constant 0 : index
    %c0_78 = arith.constant 0 : index
    %c0_79 = arith.constant 0 : index
    %174 = vector.load %arg16[%c0_77, %c0_78, %c0_79] : memref<2x1x32xf32, #tpu.memory_space<vmem>>, vector<1x1x32xf32>
    %175 = vector.shape_cast %174 : vector<1x1x32xf32> to vector<1x32xf32>
    %cst_80 = arith.constant dense<0.000000e+00> : vector<16xf32>
    %176 = vector.multi_reduction <add>, %171, %cst_80 [1] : vector<16x32xf32> to vector<16xf32>
    %177 = vector.shape_cast %176 : vector<16xf32> to vector<16x1xf32>
    %cst_81 = arith.constant 3.200000e+01 : f32
    %178 = vector.broadcast %cst_81 : f32 to vector<16x1xf32>
    %179 = arith.divf %177, %178 : vector<16x1xf32>
    %180 = vector.broadcast %179 : vector<16x1xf32> to vector<16x32xf32>
    %181 = arith.subf %171, %180 : vector<16x32xf32>
    %182 = arith.mulf %181, %181 : vector<16x32xf32>
    %cst_82 = arith.constant dense<0.000000e+00> : vector<16xf32>
    %183 = vector.multi_reduction <add>, %182, %cst_82 [1] : vector<16x32xf32> to vector<16xf32>
    %184 = vector.shape_cast %183 : vector<16xf32> to vector<16x1xf32>
    %cst_83 = arith.constant 3.200000e+01 : f32
    %185 = vector.broadcast %cst_83 : f32 to vector<16x1xf32>
    %186 = arith.divf %184, %185 : vector<16x1xf32>
    %187 = vector.broadcast %179 : vector<16x1xf32> to vector<16x32xf32>
    %188 = arith.subf %171, %187 : vector<16x32xf32>
    %cst_84 = arith.constant 9.99999996E-13 : f32
    %189 = vector.broadcast %cst_84 : f32 to vector<16x1xf32>
    %190 = arith.addf %186, %189 : vector<16x1xf32>
    %191 = math.rsqrt %190 : vector<16x1xf32>
    %192 = vector.broadcast %191 : vector<16x1xf32> to vector<16x32xf32>
    %193 = arith.mulf %188, %192 : vector<16x32xf32>
    %194 = vector.broadcast %173 : vector<1x32xf32> to vector<16x32xf32>
    %195 = arith.mulf %193, %194 : vector<16x32xf32>
    %196 = vector.broadcast %175 : vector<1x32xf32> to vector<16x32xf32>
    %197 = arith.addf %195, %196 : vector<16x32xf32>
    %c1 = arith.constant 1 : index
    %c0_85 = arith.constant 0 : index
    %c0_86 = arith.constant 0 : index
    %198 = vector.load %arg5[%c1, %c0_85, %c0_86] : memref<2x32x96xf32, #tpu.memory_space<vmem>>, vector<1x32x96xf32>
    %199 = vector.shape_cast %198 : vector<1x32x96xf32> to vector<32x96xf32>
    %cst_87 = arith.constant dense<0.000000e+00> : vector<16x96xf32>
    %200 = tpu.matmul %197, %199, %cst_87 {dimension_numbers = #tpu.dot_dimension_numbers<[1], [0], [0], [1], [0, 0, 1, 1], [], []>} : vector<16x32xf32>, vector<32x96xf32>, vector<16x96xf32> -> vector<16x96xf32>
    %c1_88 = arith.constant 1 : index
    %c0_89 = arith.constant 0 : index
    %c0_90 = arith.constant 0 : index
    %201 = vector.load %arg6[%c1_88, %c0_89, %c0_90] : memref<2x1x96xf32, #tpu.memory_space<vmem>>, vector<1x1x96xf32>
    %202 = vector.shape_cast %201 : vector<1x1x96xf32> to vector<1x96xf32>
    %203 = vector.broadcast %202 : vector<1x96xf32> to vector<16x96xf32>
    %204 = arith.addf %200, %203 : vector<16x96xf32>
    %205 = vector.extract_strided_slice %204 {offsets = [0, 0], sizes = [16, 8], strides = [1, 1]} : vector<16x96xf32> to vector<16x8xf32>
    %cst_91 = arith.constant 0.353553385 : f32
    %206 = vector.broadcast %cst_91 : f32 to vector<16x8xf32>
    %207 = arith.mulf %205, %206 : vector<16x8xf32>
    %208 = vector.extract_strided_slice %204 {offsets = [0, 32], sizes = [16, 8], strides = [1, 1]} : vector<16x96xf32> to vector<16x8xf32>
    %209 = vector.extract_strided_slice %204 {offsets = [0, 64], sizes = [16, 8], strides = [1, 1]} : vector<16x96xf32> to vector<16x8xf32>
    %210 = tpu.transpose %208, [1, 0] : vector<16x8xf32> -> vector<8x16xf32>
    %cst_92 = arith.constant dense<0.000000e+00> : vector<16x16xf32>
    %211 = tpu.matmul %207, %210, %cst_92 {dimension_numbers = #tpu.dot_dimension_numbers<[1], [0], [0], [1], [0, 0, 1, 1], [], []>} : vector<16x8xf32>, vector<8x16xf32>, vector<16x16xf32> -> vector<16x16xf32>
    %212 = arith.addf %211, %0 : vector<16x16xf32>
    %cst_93 = arith.constant dense<0xFF800000> : vector<16xf32>
    %213 = vector.multi_reduction <maximumf>, %212, %cst_93 [1] : vector<16x16xf32> to vector<16xf32>
    %214 = vector.shape_cast %213 : vector<16xf32> to vector<16x1xf32>
    %215 = vector.broadcast %214 : vector<16x1xf32> to vector<16x16xf32>
    %216 = arith.subf %212, %215 : vector<16x16xf32>
    %217 = math.exp %216 : vector<16x16xf32>
    %cst_94 = arith.constant dense<0.000000e+00> : vector<16xf32>
    %218 = vector.multi_reduction <add>, %217, %cst_94 [1] : vector<16x16xf32> to vector<16xf32>
    %219 = vector.shape_cast %218 : vector<16xf32> to vector<16x1xf32>
    %220 = tpu.reciprocal %219 {approx = true} : vector<16x1xf32> -> vector<16x1xf32>
    %221 = vector.broadcast %220 : vector<16x1xf32> to vector<16x16xf32>
    %222 = arith.mulf %217, %221 : vector<16x16xf32>
    %cst_95 = arith.constant dense<0.000000e+00> : vector<16x8xf32>
    %223 = tpu.matmul %222, %209, %cst_95 {dimension_numbers = #tpu.dot_dimension_numbers<[1], [0], [0], [1], [0, 0, 1, 1], [], []>} : vector<16x16xf32>, vector<16x8xf32>, vector<16x8xf32> -> vector<16x8xf32>
    %224 = vector.extract_strided_slice %204 {offsets = [0, 8], sizes = [16, 8], strides = [1, 1]} : vector<16x96xf32> to vector<16x8xf32>
    %cst_96 = arith.constant 0.353553385 : f32
    %225 = vector.broadcast %cst_96 : f32 to vector<16x8xf32>
    %226 = arith.mulf %224, %225 : vector<16x8xf32>
    %227 = vector.extract_strided_slice %204 {offsets = [0, 40], sizes = [16, 8], strides = [1, 1]} : vector<16x96xf32> to vector<16x8xf32>
    %228 = vector.extract_strided_slice %204 {offsets = [0, 72], sizes = [16, 8], strides = [1, 1]} : vector<16x96xf32> to vector<16x8xf32>
    %229 = tpu.transpose %227, [1, 0] : vector<16x8xf32> -> vector<8x16xf32>
    %cst_97 = arith.constant dense<0.000000e+00> : vector<16x16xf32>
    %230 = tpu.matmul %226, %229, %cst_97 {dimension_numbers = #tpu.dot_dimension_numbers<[1], [0], [0], [1], [0, 0, 1, 1], [], []>} : vector<16x8xf32>, vector<8x16xf32>, vector<16x16xf32> -> vector<16x16xf32>
    %231 = arith.addf %230, %0 : vector<16x16xf32>
    %cst_98 = arith.constant dense<0xFF800000> : vector<16xf32>
    %232 = vector.multi_reduction <maximumf>, %231, %cst_98 [1] : vector<16x16xf32> to vector<16xf32>
    %233 = vector.shape_cast %232 : vector<16xf32> to vector<16x1xf32>
    %234 = vector.broadcast %233 : vector<16x1xf32> to vector<16x16xf32>
    %235 = arith.subf %231, %234 : vector<16x16xf32>
    %236 = math.exp %235 : vector<16x16xf32>
    %cst_99 = arith.constant dense<0.000000e+00> : vector<16xf32>
    %237 = vector.multi_reduction <add>, %236, %cst_99 [1] : vector<16x16xf32> to vector<16xf32>
    %238 = vector.shape_cast %237 : vector<16xf32> to vector<16x1xf32>
    %239 = tpu.reciprocal %238 {approx = true} : vector<16x1xf32> -> vector<16x1xf32>
    %240 = vector.broadcast %239 : vector<16x1xf32> to vector<16x16xf32>
    %241 = arith.mulf %236, %240 : vector<16x16xf32>
    %cst_100 = arith.constant dense<0.000000e+00> : vector<16x8xf32>
    %242 = tpu.matmul %241, %228, %cst_100 {dimension_numbers = #tpu.dot_dimension_numbers<[1], [0], [0], [1], [0, 0, 1, 1], [], []>} : vector<16x16xf32>, vector<16x8xf32>, vector<16x8xf32> -> vector<16x8xf32>
    %243 = vector.extract_strided_slice %204 {offsets = [0, 16], sizes = [16, 8], strides = [1, 1]} : vector<16x96xf32> to vector<16x8xf32>
    %cst_101 = arith.constant 0.353553385 : f32
    %244 = vector.broadcast %cst_101 : f32 to vector<16x8xf32>
    %245 = arith.mulf %243, %244 : vector<16x8xf32>
    %246 = vector.extract_strided_slice %204 {offsets = [0, 48], sizes = [16, 8], strides = [1, 1]} : vector<16x96xf32> to vector<16x8xf32>
    %247 = vector.extract_strided_slice %204 {offsets = [0, 80], sizes = [16, 8], strides = [1, 1]} : vector<16x96xf32> to vector<16x8xf32>
    %248 = tpu.transpose %246, [1, 0] : vector<16x8xf32> -> vector<8x16xf32>
    %cst_102 = arith.constant dense<0.000000e+00> : vector<16x16xf32>
    %249 = tpu.matmul %245, %248, %cst_102 {dimension_numbers = #tpu.dot_dimension_numbers<[1], [0], [0], [1], [0, 0, 1, 1], [], []>} : vector<16x8xf32>, vector<8x16xf32>, vector<16x16xf32> -> vector<16x16xf32>
    %250 = arith.addf %249, %0 : vector<16x16xf32>
    %cst_103 = arith.constant dense<0xFF800000> : vector<16xf32>
    %251 = vector.multi_reduction <maximumf>, %250, %cst_103 [1] : vector<16x16xf32> to vector<16xf32>
    %252 = vector.shape_cast %251 : vector<16xf32> to vector<16x1xf32>
    %253 = vector.broadcast %252 : vector<16x1xf32> to vector<16x16xf32>
    %254 = arith.subf %250, %253 : vector<16x16xf32>
    %255 = math.exp %254 : vector<16x16xf32>
    %cst_104 = arith.constant dense<0.000000e+00> : vector<16xf32>
    %256 = vector.multi_reduction <add>, %255, %cst_104 [1] : vector<16x16xf32> to vector<16xf32>
    %257 = vector.shape_cast %256 : vector<16xf32> to vector<16x1xf32>
    %258 = tpu.reciprocal %257 {approx = true} : vector<16x1xf32> -> vector<16x1xf32>
    %259 = vector.broadcast %258 : vector<16x1xf32> to vector<16x16xf32>
    %260 = arith.mulf %255, %259 : vector<16x16xf32>
    %cst_105 = arith.constant dense<0.000000e+00> : vector<16x8xf32>
    %261 = tpu.matmul %260, %247, %cst_105 {dimension_numbers = #tpu.dot_dimension_numbers<[1], [0], [0], [1], [0, 0, 1, 1], [], []>} : vector<16x16xf32>, vector<16x8xf32>, vector<16x8xf32> -> vector<16x8xf32>
    %262 = vector.extract_strided_slice %204 {offsets = [0, 24], sizes = [16, 8], strides = [1, 1]} : vector<16x96xf32> to vector<16x8xf32>
    %cst_106 = arith.constant 0.353553385 : f32
    %263 = vector.broadcast %cst_106 : f32 to vector<16x8xf32>
    %264 = arith.mulf %262, %263 : vector<16x8xf32>
    %265 = vector.extract_strided_slice %204 {offsets = [0, 56], sizes = [16, 8], strides = [1, 1]} : vector<16x96xf32> to vector<16x8xf32>
    %266 = vector.extract_strided_slice %204 {offsets = [0, 88], sizes = [16, 8], strides = [1, 1]} : vector<16x96xf32> to vector<16x8xf32>
    %267 = tpu.transpose %265, [1, 0] : vector<16x8xf32> -> vector<8x16xf32>
    %cst_107 = arith.constant dense<0.000000e+00> : vector<16x16xf32>
    %268 = tpu.matmul %264, %267, %cst_107 {dimension_numbers = #tpu.dot_dimension_numbers<[1], [0], [0], [1], [0, 0, 1, 1], [], []>} : vector<16x8xf32>, vector<8x16xf32>, vector<16x16xf32> -> vector<16x16xf32>
    %269 = arith.addf %268, %0 : vector<16x16xf32>
    %cst_108 = arith.constant dense<0xFF800000> : vector<16xf32>
    %270 = vector.multi_reduction <maximumf>, %269, %cst_108 [1] : vector<16x16xf32> to vector<16xf32>
    %271 = vector.shape_cast %270 : vector<16xf32> to vector<16x1xf32>
    %272 = vector.broadcast %271 : vector<16x1xf32> to vector<16x16xf32>
    %273 = arith.subf %269, %272 : vector<16x16xf32>
    %274 = math.exp %273 : vector<16x16xf32>
    %cst_109 = arith.constant dense<0.000000e+00> : vector<16xf32>
    %275 = vector.multi_reduction <add>, %274, %cst_109 [1] : vector<16x16xf32> to vector<16xf32>
    %276 = vector.shape_cast %275 : vector<16xf32> to vector<16x1xf32>
    %277 = tpu.reciprocal %276 {approx = true} : vector<16x1xf32> -> vector<16x1xf32>
    %278 = vector.broadcast %277 : vector<16x1xf32> to vector<16x16xf32>
    %279 = arith.mulf %274, %278 : vector<16x16xf32>
    %cst_110 = arith.constant dense<0.000000e+00> : vector<16x8xf32>
    %280 = tpu.matmul %279, %266, %cst_110 {dimension_numbers = #tpu.dot_dimension_numbers<[1], [0], [0], [1], [0, 0, 1, 1], [], []>} : vector<16x16xf32>, vector<16x8xf32>, vector<16x8xf32> -> vector<16x8xf32>
    %281 = tpu.concatenate %223, %242, %261, %280 in 1 : vector<16x8xf32>, vector<16x8xf32>, vector<16x8xf32>, vector<16x8xf32> -> vector<16x32xf32>
    %c1_111 = arith.constant 1 : index
    %c0_112 = arith.constant 0 : index
    %c0_113 = arith.constant 0 : index
    %282 = vector.load %arg7[%c1_111, %c0_112, %c0_113] : memref<2x32x32xf32, #tpu.memory_space<vmem>>, vector<1x32x32xf32>
    %283 = vector.shape_cast %282 : vector<1x32x32xf32> to vector<32x32xf32>
    %cst_114 = arith.constant dense<0.000000e+00> : vector<16x32xf32>
    %284 = tpu.matmul %281, %283, %cst_114 {dimension_numbers = #tpu.dot_dimension_numbers<[1], [0], [0], [1], [0, 0, 1, 1], [], []>} : vector<16x32xf32>, vector<32x32xf32>, vector<16x32xf32> -> vector<16x32xf32>
    %c1_115 = arith.constant 1 : index
    %c0_116 = arith.constant 0 : index
    %c0_117 = arith.constant 0 : index
    %285 = vector.load %arg8[%c1_115, %c0_116, %c0_117] : memref<2x1x32xf32, #tpu.memory_space<vmem>>, vector<1x1x32xf32>
    %286 = vector.shape_cast %285 : vector<1x1x32xf32> to vector<1x32xf32>
    %287 = vector.broadcast %286 : vector<1x32xf32> to vector<16x32xf32>
    %288 = arith.addf %284, %287 : vector<16x32xf32>
    %289 = arith.addf %197, %288 : vector<16x32xf32>
    %c1_118 = arith.constant 1 : index
    %c0_119 = arith.constant 0 : index
    %c0_120 = arith.constant 0 : index
    %290 = vector.load %arg9[%c1_118, %c0_119, %c0_120] : memref<2x1x32xf32, #tpu.memory_space<vmem>>, vector<1x1x32xf32>
    %291 = vector.shape_cast %290 : vector<1x1x32xf32> to vector<1x32xf32>
    %c1_121 = arith.constant 1 : index
    %c0_122 = arith.constant 0 : index
    %c0_123 = arith.constant 0 : index
    %292 = vector.load %arg10[%c1_121, %c0_122, %c0_123] : memref<2x1x32xf32, #tpu.memory_space<vmem>>, vector<1x1x32xf32>
    %293 = vector.shape_cast %292 : vector<1x1x32xf32> to vector<1x32xf32>
    %cst_124 = arith.constant dense<0.000000e+00> : vector<16xf32>
    %294 = vector.multi_reduction <add>, %289, %cst_124 [1] : vector<16x32xf32> to vector<16xf32>
    %295 = vector.shape_cast %294 : vector<16xf32> to vector<16x1xf32>
    %cst_125 = arith.constant 3.200000e+01 : f32
    %296 = vector.broadcast %cst_125 : f32 to vector<16x1xf32>
    %297 = arith.divf %295, %296 : vector<16x1xf32>
    %298 = vector.broadcast %297 : vector<16x1xf32> to vector<16x32xf32>
    %299 = arith.subf %289, %298 : vector<16x32xf32>
    %300 = arith.mulf %299, %299 : vector<16x32xf32>
    %cst_126 = arith.constant dense<0.000000e+00> : vector<16xf32>
    %301 = vector.multi_reduction <add>, %300, %cst_126 [1] : vector<16x32xf32> to vector<16xf32>
    %302 = vector.shape_cast %301 : vector<16xf32> to vector<16x1xf32>
    %cst_127 = arith.constant 3.200000e+01 : f32
    %303 = vector.broadcast %cst_127 : f32 to vector<16x1xf32>
    %304 = arith.divf %302, %303 : vector<16x1xf32>
    %305 = vector.broadcast %297 : vector<16x1xf32> to vector<16x32xf32>
    %306 = arith.subf %289, %305 : vector<16x32xf32>
    %cst_128 = arith.constant 9.99999996E-13 : f32
    %307 = vector.broadcast %cst_128 : f32 to vector<16x1xf32>
    %308 = arith.addf %304, %307 : vector<16x1xf32>
    %309 = math.rsqrt %308 : vector<16x1xf32>
    %310 = vector.broadcast %309 : vector<16x1xf32> to vector<16x32xf32>
    %311 = arith.mulf %306, %310 : vector<16x32xf32>
    %312 = vector.broadcast %291 : vector<1x32xf32> to vector<16x32xf32>
    %313 = arith.mulf %311, %312 : vector<16x32xf32>
    %314 = vector.broadcast %293 : vector<1x32xf32> to vector<16x32xf32>
    %315 = arith.addf %313, %314 : vector<16x32xf32>
    %c1_129 = arith.constant 1 : index
    %c0_130 = arith.constant 0 : index
    %c0_131 = arith.constant 0 : index
    %316 = vector.load %arg11[%c1_129, %c0_130, %c0_131] : memref<2x32x64xf32, #tpu.memory_space<vmem>>, vector<1x32x64xf32>
    %317 = vector.shape_cast %316 : vector<1x32x64xf32> to vector<32x64xf32>
    %cst_132 = arith.constant dense<0.000000e+00> : vector<16x64xf32>
    %318 = tpu.matmul %315, %317, %cst_132 {dimension_numbers = #tpu.dot_dimension_numbers<[1], [0], [0], [1], [0, 0, 1, 1], [], []>} : vector<16x32xf32>, vector<32x64xf32>, vector<16x64xf32> -> vector<16x64xf32>
    %c1_133 = arith.constant 1 : index
    %c0_134 = arith.constant 0 : index
    %c0_135 = arith.constant 0 : index
    %319 = vector.load %arg12[%c1_133, %c0_134, %c0_135] : memref<2x1x64xf32, #tpu.memory_space<vmem>>, vector<1x1x64xf32>
    %320 = vector.shape_cast %319 : vector<1x1x64xf32> to vector<1x64xf32>
    %321 = vector.broadcast %320 : vector<1x64xf32> to vector<16x64xf32>
    %322 = arith.addf %318, %321 : vector<16x64xf32>
    %cst_136 = arith.constant 5.000000e-01 : f32
    %323 = vector.broadcast %cst_136 : f32 to vector<16x64xf32>
    %324 = arith.mulf %323, %322 : vector<16x64xf32>
    %cst_137 = arith.constant 4.471500e-02 : f32
    %325 = vector.broadcast %cst_137 : f32 to vector<16x64xf32>
    %326 = arith.mulf %325, %322 : vector<16x64xf32>
    %327 = arith.mulf %326, %322 : vector<16x64xf32>
    %328 = arith.mulf %327, %322 : vector<16x64xf32>
    %329 = arith.addf %322, %328 : vector<16x64xf32>
    %cst_138 = arith.constant 0.797884583 : f32
    %330 = vector.broadcast %cst_138 : f32 to vector<16x64xf32>
    %331 = arith.mulf %330, %329 : vector<16x64xf32>
    %332 = math.tanh %331 : vector<16x64xf32>
    %cst_139 = arith.constant 1.000000e+00 : f32
    %333 = vector.broadcast %cst_139 : f32 to vector<16x64xf32>
    %334 = arith.addf %333, %332 : vector<16x64xf32>
    %335 = arith.mulf %324, %334 : vector<16x64xf32>
    %c1_140 = arith.constant 1 : index
    %c0_141 = arith.constant 0 : index
    %c0_142 = arith.constant 0 : index
    %336 = vector.load %arg13[%c1_140, %c0_141, %c0_142] : memref<2x64x32xf32, #tpu.memory_space<vmem>>, vector<1x64x32xf32>
    %337 = vector.shape_cast %336 : vector<1x64x32xf32> to vector<64x32xf32>
    %cst_143 = arith.constant dense<0.000000e+00> : vector<16x32xf32>
    %338 = tpu.matmul %335, %337, %cst_143 {dimension_numbers = #tpu.dot_dimension_numbers<[1], [0], [0], [1], [0, 0, 1, 1], [], []>} : vector<16x64xf32>, vector<64x32xf32>, vector<16x32xf32> -> vector<16x32xf32>
    %c1_144 = arith.constant 1 : index
    %c0_145 = arith.constant 0 : index
    %c0_146 = arith.constant 0 : index
    %339 = vector.load %arg14[%c1_144, %c0_145, %c0_146] : memref<2x1x32xf32, #tpu.memory_space<vmem>>, vector<1x1x32xf32>
    %340 = vector.shape_cast %339 : vector<1x1x32xf32> to vector<1x32xf32>
    %341 = vector.broadcast %340 : vector<1x32xf32> to vector<16x32xf32>
    %342 = arith.addf %338, %341 : vector<16x32xf32>
    %343 = arith.addf %315, %342 : vector<16x32xf32>
    %c1_147 = arith.constant 1 : index
    %c0_148 = arith.constant 0 : index
    %c0_149 = arith.constant 0 : index
    %344 = vector.load %arg15[%c1_147, %c0_148, %c0_149] : memref<2x1x32xf32, #tpu.memory_space<vmem>>, vector<1x1x32xf32>
    %345 = vector.shape_cast %344 : vector<1x1x32xf32> to vector<1x32xf32>
    %c1_150 = arith.constant 1 : index
    %c0_151 = arith.constant 0 : index
    %c0_152 = arith.constant 0 : index
    %346 = vector.load %arg16[%c1_150, %c0_151, %c0_152] : memref<2x1x32xf32, #tpu.memory_space<vmem>>, vector<1x1x32xf32>
    %347 = vector.shape_cast %346 : vector<1x1x32xf32> to vector<1x32xf32>
    %cst_153 = arith.constant dense<0.000000e+00> : vector<16xf32>
    %348 = vector.multi_reduction <add>, %343, %cst_153 [1] : vector<16x32xf32> to vector<16xf32>
    %349 = vector.shape_cast %348 : vector<16xf32> to vector<16x1xf32>
    %cst_154 = arith.constant 3.200000e+01 : f32
    %350 = vector.broadcast %cst_154 : f32 to vector<16x1xf32>
    %351 = arith.divf %349, %350 : vector<16x1xf32>
    %352 = vector.broadcast %351 : vector<16x1xf32> to vector<16x32xf32>
    %353 = arith.subf %343, %352 : vector<16x32xf32>
    %354 = arith.mulf %353, %353 : vector<16x32xf32>
    %cst_155 = arith.constant dense<0.000000e+00> : vector<16xf32>
    %355 = vector.multi_reduction <add>, %354, %cst_155 [1] : vector<16x32xf32> to vector<16xf32>
    %356 = vector.shape_cast %355 : vector<16xf32> to vector<16x1xf32>
    %cst_156 = arith.constant 3.200000e+01 : f32
    %357 = vector.broadcast %cst_156 : f32 to vector<16x1xf32>
    %358 = arith.divf %356, %357 : vector<16x1xf32>
    %359 = vector.broadcast %351 : vector<16x1xf32> to vector<16x32xf32>
    %360 = arith.subf %343, %359 : vector<16x32xf32>
    %cst_157 = arith.constant 9.99999996E-13 : f32
    %361 = vector.broadcast %cst_157 : f32 to vector<16x1xf32>
    %362 = arith.addf %358, %361 : vector<16x1xf32>
    %363 = math.rsqrt %362 : vector<16x1xf32>
    %364 = vector.broadcast %363 : vector<16x1xf32> to vector<16x32xf32>
    %365 = arith.mulf %360, %364 : vector<16x32xf32>
    %366 = vector.broadcast %345 : vector<1x32xf32> to vector<16x32xf32>
    %367 = arith.mulf %365, %366 : vector<16x32xf32>
    %368 = vector.broadcast %347 : vector<1x32xf32> to vector<16x32xf32>
    %369 = arith.addf %367, %368 : vector<16x32xf32>
    %370 = vector.shape_cast %369 : vector<16x32xf32> to vector<2x8x32xf32>
    %371 = vector.extract_strided_slice %370 {offsets = [0, 0, 0], sizes = [2, 1, 32], strides = [1, 1, 1]} : vector<2x8x32xf32> to vector<2x1x32xf32>
    %372 = vector.shape_cast %371 : vector<2x1x32xf32> to vector<2x32xf32>
    %c0_158 = arith.constant 0 : index
    %c0_159 = arith.constant 0 : index
    %373 = vector.load %arg17[%c0_158, %c0_159] : memref<32x16xf32, #tpu.memory_space<vmem>>, vector<32x16xf32>
    %cst_160 = arith.constant dense<0.000000e+00> : vector<2x16xf32>
    %374 = tpu.matmul %372, %373, %cst_160 {dimension_numbers = #tpu.dot_dimension_numbers<[1], [0], [0], [1], [0, 0, 1, 1], [], []>} : vector<2x32xf32>, vector<32x16xf32>, vector<2x16xf32> -> vector<2x16xf32>
    %c0_161 = arith.constant 0 : index
    %c0_162 = arith.constant 0 : index
    %375 = vector.load %arg18[%c0_161, %c0_162] : memref<1x16xf32, #tpu.memory_space<vmem>>, vector<1x16xf32>
    %376 = vector.broadcast %375 : vector<1x16xf32> to vector<2x16xf32>
    %377 = arith.addf %374, %376 : vector<2x16xf32>
    %c0_163 = arith.constant 0 : index
    %c0_164 = arith.constant 0 : index
    %378 = vector.load %arg19[%c0_163, %c0_164] : memref<2x16xf32, #tpu.memory_space<vmem>>, vector<2x16xf32>
    tpu.vector_store %arg19[%c0_163, %c0_164], %377 {strides = array<i32>} : memref<2x16xf32, #tpu.memory_space<vmem>>, vector<2x16xf32>,
    return
  }
  func.func @transform_0(%arg0: i32) -> (i32, i32) {
    %c0_i32 = arith.constant 0 : i32
    %c0_i32_0 = arith.constant 0 : i32
    %c0_i32_1 = arith.constant 0 : i32
    return %c0_i32, %c0_i32_0 : i32, i32
  }
  func.func @transform_1(%arg0: i32) -> (i32, i32) {
    %c0_i32 = arith.constant 0 : i32
    %c0_i32_0 = arith.constant 0 : i32
    %c0_i32_1 = arith.constant 0 : i32
    return %c0_i32, %c0_i32_0 : i32, i32
  }
  func.func @transform_2(%arg0: i32) -> (i32, i32) {
    %c0_i32 = arith.constant 0 : i32
    %c0_i32_0 = arith.constant 0 : i32
    %c0_i32_1 = arith.constant 0 : i32
    return %c0_i32, %c0_i32_0 : i32, i32
  }
  func.func @transform_3(%arg0: i32) -> (i32, i32) {
    %c0_i32 = arith.constant 0 : i32
    %c0_i32_0 = arith.constant 0 : i32
    %c0_i32_1 = arith.constant 0 : i32
    return %c0_i32, %c0_i32_0 : i32, i32
  }
  func.func @transform_4(%arg0: i32) -> (i32, i32, i32) {
    %c0_i32 = arith.constant 0 : i32
    %c0_i32_0 = arith.constant 0 : i32
    %c0_i32_1 = arith.constant 0 : i32
    %c0_i32_2 = arith.constant 0 : i32
    return %c0_i32, %c0_i32_0, %c0_i32_1 : i32, i32, i32
  }
  func.func @transform_5(%arg0: i32) -> (i32, i32, i32) {
    %c0_i32 = arith.constant 0 : i32
    %c0_i32_0 = arith.constant 0 : i32
    %c0_i32_1 = arith.constant 0 : i32
    %c0_i32_2 = arith.constant 0 : i32
    return %c0_i32, %c0_i32_0, %c0_i32_1 : i32, i32, i32
  }
  func.func @transform_6(%arg0: i32) -> (i32, i32, i32) {
    %c0_i32 = arith.constant 0 : i32
    %c0_i32_0 = arith.constant 0 : i32
    %c0_i32_1 = arith.constant 0 : i32
    %c0_i32_2 = arith.constant 0 : i32
    return %c0_i32, %c0_i32_0, %c0_i32_1 : i32, i32, i32
  }
  func.func @transform_7(%arg0: i32) -> (i32, i32, i32) {
    %c0_i32 = arith.constant 0 : i32
    %c0_i32_0 = arith.constant 0 : i32
    %c0_i32_1 = arith.constant 0 : i32
    %c0_i32_2 = arith.constant 0 : i32
    return %c0_i32, %c0_i32_0, %c0_i32_1 : i32, i32, i32
  }
  func.func @transform_8(%arg0: i32) -> (i32, i32, i32) {
    %c0_i32 = arith.constant 0 : i32
    %c0_i32_0 = arith.constant 0 : i32
    %c0_i32_1 = arith.constant 0 : i32
    %c0_i32_2 = arith.constant 0 : i32
    return %c0_i32, %c0_i32_0, %c0_i32_1 : i32, i32, i32
  }
  func.func @transform_9(%arg0: i32) -> (i32, i32, i32) {
    %c0_i32 = arith.constant 0 : i32
    %c0_i32_0 = arith.constant 0 : i32
    %c0_i32_1 = arith.constant 0 : i32
    %c0_i32_2 = arith.constant 0 : i32
    return %c0_i32, %c0_i32_0, %c0_i32_1 : i32, i32, i32
  }
  func.func @transform_10(%arg0: i32) -> (i32, i32, i32) {
    %c0_i32 = arith.constant 0 : i32
    %c0_i32_0 = arith.constant 0 : i32
    %c0_i32_1 = arith.constant 0 : i32
    %c0_i32_2 = arith.constant 0 : i32
    return %c0_i32, %c0_i32_0, %c0_i32_1 : i32, i32, i32
  }
  func.func @transform_11(%arg0: i32) -> (i32, i32, i32) {
    %c0_i32 = arith.constant 0 : i32
    %c0_i32_0 = arith.constant 0 : i32
    %c0_i32_1 = arith.constant 0 : i32
    %c0_i32_2 = arith.constant 0 : i32
    return %c0_i32, %c0_i32_0, %c0_i32_1 : i32, i32, i32
  }
  func.func @transform_12(%arg0: i32) -> (i32, i32, i32) {
    %c0_i32 = arith.constant 0 : i32
    %c0_i32_0 = arith.constant 0 : i32
    %c0_i32_1 = arith.constant 0 : i32
    %c0_i32_2 = arith.constant 0 : i32
    return %c0_i32, %c0_i32_0, %c0_i32_1 : i32, i32, i32
  }
  func.func @transform_13(%arg0: i32) -> (i32, i32, i32) {
    %c0_i32 = arith.constant 0 : i32
    %c0_i32_0 = arith.constant 0 : i32
    %c0_i32_1 = arith.constant 0 : i32
    %c0_i32_2 = arith.constant 0 : i32
    return %c0_i32, %c0_i32_0, %c0_i32_1 : i32, i32, i32
  }
  func.func @transform_14(%arg0: i32) -> (i32, i32, i32) {
    %c0_i32 = arith.constant 0 : i32
    %c0_i32_0 = arith.constant 0 : i32
    %c0_i32_1 = arith.constant 0 : i32
    %c0_i32_2 = arith.constant 0 : i32
    return %c0_i32, %c0_i32_0, %c0_i32_1 : i32, i32, i32
  }
  func.func @transform_15(%arg0: i32) -> (i32, i32, i32) {
    %c0_i32 = arith.constant 0 : i32
    %c0_i32_0 = arith.constant 0 : i32
    %c0_i32_1 = arith.constant 0 : i32
    %c0_i32_2 = arith.constant 0 : i32
    return %c0_i32, %c0_i32_0, %c0_i32_1 : i32, i32, i32
  }
  func.func @transform_16(%arg0: i32) -> (i32, i32) {
    %c0_i32 = arith.constant 0 : i32
    %c0_i32_0 = arith.constant 0 : i32
    %c0_i32_1 = arith.constant 0 : i32
    return %c0_i32, %c0_i32_0 : i32, i32
  }
  func.func @transform_17(%arg0: i32) -> (i32, i32) {
    %c0_i32 = arith.constant 0 : i32
    %c0_i32_0 = arith.constant 0 : i32
    %c0_i32_1 = arith.constant 0 : i32
    return %c0_i32, %c0_i32_0 : i32, i32
  }
  func.func @transform_18(%arg0: i32) -> (i32, i32) {
    %c0_i32 = arith.constant 0 : i32
    %c0_i32_0 = arith.constant 0 : i32
    %c0_i32_1 = arith.constant 0 : i32
    return %c0_i32, %c0_i32_0 : i32, i32
  }
}

</mosaic_0001>

<bundles_post_ra>
// kernel: _lambda_.1
= control target key start
LH: loop header
LB: loop body
LE: loop exit
PB: predicated region body
PF: predicated region fallthrough
CT: control target
= control target key end

     0   :  { %s4106_s0 = inlined_call_operand.vmem [shape: f32[16,32], index: 0, kind: input, shape index: {}]   ;;  %s4107_s1 = inlined_call_operand.vmem [shape: f32[16,16], index: 1, kind: input, shape index: {}]   ;;  %s4108_s2 = inlined_call_operand.vmem [shape: f32[1,32], index: 2, kind: input, shape index: {}]   ;;  %s4109_s3 = inlined_call_operand.vmem [shape: f32[1,32], index: 3, kind: input, shape index: {}]   ;;  %s4110_s4 = inlined_call_operand.vmem [shape: f32[2,32,96], index: 4, kind: input, shape index: {}]   ;;  %s4111_s5 = inlined_call_operand.vmem [shape: f32[2,1,96], index: 5, kind: input, shape index: {}]   ;;  %s4112_s6 = inlined_call_operand.vmem [shape: f32[2,32,32], index: 6, kind: input, shape index: {}]   ;;  %s4113_s7 = inlined_call_operand.vmem [shape: f32[2,1,32], index: 7, kind: input, shape index: {}]   ;;  %s4114_s8 = inlined_call_operand.vmem [shape: f32[2,1,32], index: 8, kind: input, shape index: {}]   ;;  %s4115_s9 = inlined_call_operand.vmem [shape: f32[2,1,32], index: 9, kind: input, shape index: {}]   ;;  %s4116_s10 = inlined_call_operand.vmem [shape: f32[2,32,64], index: 10, kind: input, shape index: {}]   ;;  %s4117_s11 = inlined_call_operand.vmem [shape: f32[2,1,64], index: 11, kind: input, shape index: {}]   ;;  %s4118_s12 = inlined_call_operand.vmem [shape: f32[2,64,32], index: 12, kind: input, shape index: {}]   ;;  %s4119_s13 = inlined_call_operand.vmem [shape: f32[2,1,32], index: 13, kind: input, shape index: {}]   ;;  %s4120_s14 = inlined_call_operand.vmem [shape: f32[2,1,32], index: 14, kind: input, shape index: {}]   ;;  %s4121_s15 = inlined_call_operand.vmem [shape: f32[2,1,32], index: 15, kind: input, shape index: {}]   ;;  %s4122_s16 = inlined_call_operand.vmem [shape: f32[32,16], index: 16, kind: input, shape index: {}]   ;;  %s4123_s17 = inlined_call_operand.vmem [shape: f32[1,16], index: 17, kind: input, shape index: {}]   ;;  %s4124_s18 = inlined_call_operand.hbm [shape: f32[2,16], index: 18, kind: output, shape index: {}]  }
   0x1   :  { %4141 = sst [smem:[#allocation5_spill]] %s4106_s0 }
   0x2   :  { %4142 = sst [smem:[#allocation6_spill]] %s4107_s1 }
   0x3   :  { %4143 = sst [smem:[#allocation7_spill]] %s4108_s2 }
   0x4   :  { %s4144_s29 = sld [smem:[#allocation5_spill]]  ;;  %vm66_vm0 = vcmask 261120  }
   0xa   :  { %v62_v0 = vld [vmem:[%s4144_s29] sm:$0xff]  ;;  %v63_v1 = vld [vmem:[%s4144_s29 + $0x8] sm:$0xff] }
   0xb   :  { %23 = vsyncpa [#allocation3], 0  ;;  %v67_v2 = vsel %vm66_vm0, %v62_v0, 0.0  ;;  %v70_v3 = vsel %vm66_vm0, %v63_v1, 0.0  ;;  %v113_v14 = vld [vmem:[%s4110_s4 + $0x18] sm:$0xff]  ;;  %v112_v15 = vld [vmem:[%s4110_s4 + $0x10] sm:$0xff] }
   0xc   :  { %68 = vadd.xlane.f32.xlu0 %v67_v2  ;;  %3095 = vmatprep.subr.mxu0 %v113_v14  ;;  %v111_v16 = vld [vmem:[%s4110_s4 + $0x8] sm:$0xff]  ;;  %v110_v17 = vld [vmem:[%s4110_s4] sm:$0xff]  ;;  %s4145_s27 = sld [smem:[#allocation7_spill]]  ;;  %vm210_vm1 = vcmask 64512   ;;  %vm296_vm2 = vcmask 130048   ;;  %s3456_s2 = smov 64  }
   0xd   :  { %3096 = vmatpush3.msra.mxu0 %v113_v14  ;;  %v2859_v27 = vld [vmem:[%s4109_s3] ss:$0 sm:$0xff]  ;;  %s3455_s3 = smov 96   ;;  %s4146_s20 = sld [smem:[#allocation6_spill]]  ;;  %vm1034_vm3 = vcmask 195584   ;;  %vm1300_vm4 = vcmask 523264  }
   0xe   :  { %3097 = vmatprep.subr.mxu0 %v112_v15  ;;  %v2860_v34 = vld [vmem:[%s4111_s5] ss:$0 sm:$0xff]  ;;  %s3457_s23 = smov 88   ;;  %s3458_s24 = smov 120   ;;  %vm3470_vm5 = vmmov 0   ;;  %vm2768_vm6 = vcmask 1041409  }
   0xf   :  { %3098 = vmatpush3.msra.mxu0 %v112_v15  ;;  %s3459_s25 = smov 56   ;;  %s3460_s26 = smov 80   ;;  %vm2842_vm7 = vcmask 123904  }
  0x10   :  { %71 = vadd.xlane.f32.xlu0 %v70_v3  ;;  %3099 = vmatprep.subr.mxu0 %v111_v16  ;;  %s4137_s28 = smov 48   ;;  %s4135_s29 = smov 72  }
  0x11   :  { %3100 = vmatpush3.msra.mxu0 %v111_v16  ;;  %s4133_s30 = smov 104   ;;  %s4131_s0 = smov 40  }
  0x12   :  { %3101 = vmatprep.subr.mxu0 %v110_v17  ;;  %v2858_v25 = vld [vmem:[%s4145_s27] ss:$0 sm:$0xff]  ;;  %s3461_s27 = smov 112   ;;  %s4129_s19 = smov 8  }
  0x13   :  { %3102 = vmatpush3.msra.mxu0 %v110_v17  ;;  %v3631_v43 = vld [vmem:[%s4146_s20 + $0x8] sm:$0xff]  ;;  %v3636_v45 = vld [vmem:[%s4146_s20] sm:$0xff]  ;;  %s4127_s1 = smov 16   ;;  %s4139_s21 = smov 24  }
  0x14   :  { %s4152_s22 = smov 16  }
  0x95   :  { %v69_v4 = vpop.xlane.xlu0 %68 }
  0x96   :  { %v74_v5 = vmul.f32 0.03125, %v69_v4 }
  0x98   :  { %v76_v6 = vsub.f32 %v62_v0, %v74_v5 }
  0x99   :  { %v72_v7 = vpop.xlane.xlu0 %71 }
  0x9a   :  { %v75_v8 = vmul.f32 0.03125, %v72_v7  ;;  %v78_v9 = vmul.f32 %v76_v6, %v76_v6 }
  0x9c   :  { %v77_v10 = vsub.f32 %v63_v1, %v75_v8  ;;  %v80_v11 = vsel %vm66_vm0, %v78_v9, 0.0 }
  0x9d   :  { %81 = vadd.xlane.f32.xlu1 %v80_v11 }
  0x9e   :  { %v79_v12 = vmul.f32 %v77_v10, %v77_v10 }
  0xa0   :  { %v83_v13 = vsel %vm66_vm0, %v79_v12, 0.0 }
  0xa1   :  { %84 = vadd.xlane.f32.xlu1 %v83_v13 }
 0x126   :  { %v82_v18 = vpop.xlane.xlu1 %81 }
 0x127   :  { %v86_v19 = vmul.f32 0.03125, %v82_v18 }
 0x129   :  { %v88_v20 = vadd.f32 1e-12, %v86_v19 }
 0x12a   :  { %v85_v21 = vpop.xlane.xlu1 %84 }
 0x12b   :  { %3339 = vrsqrt.f32 %v88_v20  ;;  %v87_v22 = vmul.f32 0.03125, %v85_v21 }
 0x12d   :  { %v89_v23 = vadd.f32 1e-12, %v87_v22 }
 0x12f   :  { %3341 = vrsqrt.f32 %v89_v23 }
 0x138   :  { %v3340_v24 = vpop.eup %3339 }
 0x139   :  { %v92_v26 = vmul.f32 %v3340_v24, %v76_v6 }
 0x13b   :  { %v100_v28 = vmul.f32 %v2858_v25, %v92_v26 }
 0x13c   :  { %v3342_v29 = vpop.eup %3341 }
 0x13d   :  { %v93_v30 = vmul.f32 %v3342_v29, %v77_v10  ;;  %v3595_v31 = vadd.f32 %v2859_v27, %v100_v28 }
 0x13f   :  { %v101_v32 = vmul.f32 %v2858_v25, %v93_v30  ;;  %3103 = vmatprep.mubr.msk.f32.mxu0 %vm66_vm0, %v3595_v31 }
 0x141   :  { %v3599_v33 = vadd.f32 %v2859_v27, %v101_v32 }
 0x143   :  { %3104 = vmatmul.mubr.msk.f32.vlgmr.msra.gmra.mxu0 %vm66_vm0, %v3599_v33 }
 0x203   :  { %v3105_v35 = vpop.f32.mrf.mxu0 }
 0x204   :  { %v3606_v36 = vadd.f32 %v3105_v35, %v2860_v34 }
 0x205   :  { %v193_v37 = vpop.f32.mrf.mxu0 }
 0x206   :  { %v3608_v38 = vadd.f32 %v2860_v34, %v193_v37  ;;  %208 = vrot.lane.b32.xlu0 %v3606_v36, %s3455_s3  ;;  %v3624_v42 = vmul.f32 0.35355338, %v3606_v36 }
 0x208   :  { %206 = vrot.lane.b32.xlu1 %v3608_v38, %s3455_s3  ;;  %v3615_v39 = vmul.f32 0.35355338, %v3608_v38 }
 0x20a   :  { %3110 = vmatprep.mubr.msk.f32.mxu1 %vm210_vm1, %v3615_v39 }
 0x278   :  { %v209_v40 = vpop.permute.xlu0 %208 }
 0x279   :  { %3106 = vmatprep.subr.msk.mxu1 %vm210_vm1, %v209_v40 }
 0x27a   :  { %3107 = vmatpush3.xpose.msk.msra.mxu1 %vm210_vm1, %v209_v40  ;;  %v207_v41 = vpop.permute.xlu1 %206 }
 0x27b   :  { %3108 = vmatprep.subr.msk.mxu1 %vm210_vm1, %v207_v41 }
 0x27e   :  { %3109 = vmatpush3.xpose.msk.msra.mxu1 %vm210_vm1, %v207_v41 }
 0x281   :  { %3111 = vmatmul.mubr.msk.f32.vlgmr.msra.gmra.mxu1 %vm210_vm1, %v3624_v42 }
 0x341   :  { %v3112_v44 = vpop.f32.mrf.mxu1 }
 0x342   :  { %v293_v46 = vadd.f32 %v3112_v44, %v3631_v43 }
 0x343   :  { %v287_v47 = vpop.f32.mrf.mxu1 }
 0x344   :  { %v288_v48 = vadd.f32 %v287_v47, %v3636_v45  ;;  %v300_v49 = vsel %vm296_vm2, %v293_v46, -inf }
 0x345   :  { %301 = vmax.xlane.f32.xlu0 %v300_v49 }
 0x346   :  { %v297_v50 = vsel %vm296_vm2, %v288_v48, -inf }
 0x347   :  { %298 = vmax.xlane.f32.xlu1 %v297_v50 }
 0x3ce   :  { %v302_v51 = vpop.xlane.xlu0 %301 }
 0x3cf   :  { %v304_v52 = vsub.f32 %v293_v46, %v302_v51 }
 0x3d0   :  { %v299_v53 = vpop.xlane.xlu1 %298 }
 0x3d1   :  { %v307_v54 = vmul.f32 1.442695, %v304_v52  ;;  %v303_v55 = vsub.f32 %v288_v48, %v299_v53 }
 0x3d3   :  { %3343 = vpow2.f32 %v307_v54  ;;  %v305_v56 = vmul.f32 1.442695, %v303_v55 }
 0x3d5   :  { %3345 = vpow2.f32 %v305_v56 }
 0x3e0   :  { %v3344_v57 = vpop.eup %3343 }
 0x3e1   :  { %v312_v58 = vsel %vm296_vm2, %v3344_v57, 0.0 }
 0x3e2   :  { %v3346_v59 = vpop.eup %3345  ;;  %313 = vadd.xlane.f32.xlu1 %v312_v58 }
 0x3e3   :  { %v309_v60 = vsel %vm296_vm2, %v3346_v59, 0.0 }
 0x3e4   :  { %310 = vadd.xlane.f32.xlu0 %v309_v60 }
 0x3f3   :  { %319 = vrot.lane.b32.xlu1 %v3608_v38, %s3456_s2 }
 0x3f7   :  { %412 = vrot.lane.b32.xlu1 %v3606_v36, %s3457_s23 }
 0x3fa   :  { %321 = vrot.lane.b32.xlu0 %v3606_v36, %s3456_s2 }
 0x3fb   :  { %410 = vrot.lane.b32.xlu1 %v3608_v38, %s3457_s23 }
 0x3fe   :  { %406 = vrot.lane.b32.xlu0 %v3615_v39, %s3458_s24 }
 0x3ff   :  { %408 = vrot.lane.b32.xlu1 %v3624_v42, %s3458_s24 }
 0x46b   :  { %v314_v61 = vpop.xlane.xlu1 %313 }
 0x46c   :  { %3347 = vrcp.f32 %v314_v61 }
 0x46d   :  { %v311_v62 = vpop.xlane.xlu0 %310 }
 0x46e   :  { %3349 = vrcp.f32 %v311_v62 }
 0x46f   :  { %v320_v63 = vpop.permute.xlu1 %319 }
 0x471   :  { %v322_v0 = vpop.permute.xlu0 %321 }
 0x472   :  { %3113 = vmatprep.subr.mxu1 %v322_v0 }
 0x473   :  { %3114 = vmatpush3.msra.mxu1 %v322_v0  ;;  %v413_v1 = vpop.permute.xlu1 %412 }
 0x474   :  { %3115 = vmatprep.subr.mxu1 %v320_v63 }
 0x475   :  { %3116 = vmatpush3.msra.mxu1 %v320_v63  ;;  %v407_v6 = vpop.permute.xlu0 %406 }
 0x476   :  { %3120 = vmatprep.subr.msk.mxu1 %vm210_vm1, %v413_v1 }
 0x477   :  { %v411_v7 = vpop.permute.xlu1 %410 }
 0x479   :  { %v3348_v2 = vpop.eup %3347 }
 0x47a   :  { %v318_v5 = vmul.f32 %v3348_v2, %v3344_v57 }
 0x47b   :  { %v3350_v3 = vpop.eup %3349  ;;  %v409_v8 = vpop.permute.xlu1 %408 }
 0x47c   :  { %v317_v4 = vmul.f32 %v3350_v3, %v3346_v59 }
 0x47e   :  { %3117 = vmatprep.mubr.msk.f32.mxu1 %vm296_vm2, %v317_v4 }
 0x47f   :  { %3118 = vmatmul.mubr.msk.f32.vlgmr.msra.gmra.mxu1 %vm296_vm2, %v318_v5 }
 0x480   :  { %3121 = vmatpush3.xpose.msk.msra.mxu1 %vm210_vm1, %v413_v1  ;;  %3124 = vmatprep.mubr.msk.f32.mxu1 %vm210_vm1, %v407_v6 }
 0x481   :  { %3122 = vmatprep.subr.msk.mxu1 %vm210_vm1, %v411_v7 }
 0x484   :  { %3123 = vmatpush3.xpose.msk.msra.mxu1 %vm210_vm1, %v411_v7 }
 0x487   :  { %3125 = vmatmul.mubr.msk.f32.vlgmr.msra.gmra.mxu1 %vm210_vm1, %v409_v8 }
 0x53f   :  { %v3664_v9 = vpop.f32.mrf.mxu1 }
 0x541   :  { %v3666_v10 = vpop.f32.mrf.mxu1 }
 0x547   :  { %v3126_v11 = vpop.f32.mrf.mxu1 }
 0x548   :  { %v494_v12 = vadd.f32 %v3126_v11, %v3631_v43 }
 0x549   :  { %v488_v13 = vpop.f32.mrf.mxu1 }
 0x54a   :  { %v489_v14 = vadd.f32 %v488_v13, %v3636_v45  ;;  %v500_v15 = vsel %vm296_vm2, %v494_v12, -inf }
 0x54b   :  { %501 = vmax.xlane.f32.xlu1 %v500_v15 }
 0x54c   :  { %v497_v16 = vsel %vm296_vm2, %v489_v14, -inf }
 0x54d   :  { %498 = vmax.xlane.f32.xlu0 %v497_v16 }
 0x55c   :  { %519 = vrot.lane.b32.xlu1 %v3608_v38, %s3459_s25 }
 0x560   :  { %612 = vrot.lane.b32.xlu1 %v3606_v36, %s3460_s26 }
 0x564   :  { %610 = vrot.lane.b32.xlu1 %v3608_v38, %s3460_s26 }
 0x568   :  { %608 = vrot.lane.b32.xlu1 %v3624_v42, %s3461_s27 }
 0x5d4   :  { %v502_v17 = vpop.xlane.xlu1 %501 }
 0x5d5   :  { %v504_v18 = vsub.f32 %v494_v12, %v502_v17 }
 0x5d6   :  { %v499_v19 = vpop.xlane.xlu0 %498 }
 0x5d7   :  { %v507_v20 = vmul.f32 1.442695, %v504_v18  ;;  %v503_v21 = vsub.f32 %v489_v14, %v499_v19 }
 0x5d8   :  { %v520_v29 = vpop.permute.xlu1 %519 }
 0x5d9   :  { %3351 = vpow2.f32 %v507_v20  ;;  %v505_v22 = vmul.f32 1.442695, %v503_v21 }
 0x5db   :  { %3353 = vpow2.f32 %v505_v22 }
 0x5dc   :  { %v613_v32 = vpop.permute.xlu1 %612 }
 0x5e0   :  { %v611_v44 = vpop.permute.xlu1 %610 }
 0x5e4   :  { %v609_v46 = vpop.permute.xlu1 %608 }
 0x5e6   :  { %v3352_v23 = vpop.eup %3351 }
 0x5e7   :  { %v512_v24 = vsel %vm296_vm2, %v3352_v23, 0.0 }
 0x5e8   :  { %v3354_v25 = vpop.eup %3353  ;;  %513 = vadd.xlane.f32.xlu0 %v512_v24 }
 0x5e9   :  { %v509_v26 = vsel %vm296_vm2, %v3354_v25, 0.0 }
 0x5ec   :  { %510 = vadd.xlane.f32.xlu0 %v509_v26 }
 0x602   :  { %521 = vrot.lane.b32.xlu0 %v3606_v36, %s3459_s25 }
 0x606   :  { %606 = vrot.lane.b32.xlu0 %v3615_v39, %s3461_s27 }
 0x671   :  { %v514_v27 = vpop.xlane.xlu0 %513 }
 0x672   :  { %3355 = vrcp.f32 %v514_v27 }
 0x675   :  { %v511_v28 = vpop.xlane.xlu0 %510 }
 0x676   :  { %3357 = vrcp.f32 %v511_v28 }
 0x679   :  { %v522_v30 = vpop.permute.xlu0 %521 }
 0x67a   :  { %3127 = vmatprep.subr.mxu0 %v522_v30 }
 0x67b   :  { %3128 = vmatpush3.msra.mxu0 %v522_v30 }
 0x67c   :  { %3129 = vmatprep.subr.mxu0 %v520_v29 }
 0x67d   :  { %3130 = vmatpush3.msra.mxu0 %v520_v29  ;;  %v607_v41 = vpop.permute.xlu0 %606 }
 0x67e   :  { %3134 = vmatprep.subr.msk.mxu0 %vm210_vm1, %v613_v32 }
 0x67f   :  { %v3356_v34 = vpop.eup %3355 }
 0x680   :  { %v518_v40 = vmul.f32 %v3356_v34, %v3352_v23 }
 0x683   :  { %v3358_v35 = vpop.eup %3357 }
 0x684   :  { %v517_v37 = vmul.f32 %v3358_v35, %v3354_v25 }
 0x686   :  { %3131 = vmatprep.mubr.msk.f32.mxu0 %vm296_vm2, %v517_v37 }
 0x687   :  { %3132 = vmatmul.mubr.msk.f32.vlgmr.msra.gmra.mxu0 %vm296_vm2, %v518_v40 }
 0x688   :  { %3135 = vmatpush3.xpose.msk.msra.mxu0 %vm210_vm1, %v613_v32  ;;  %3138 = vmatprep.mubr.msk.f32.mxu0 %vm210_vm1, %v607_v41 }
 0x689   :  { %3136 = vmatprep.subr.msk.mxu0 %vm210_vm1, %v611_v44 }
 0x68c   :  { %3137 = vmatpush3.xpose.msk.msra.mxu0 %vm210_vm1, %v611_v44 }
 0x68f   :  { %3139 = vmatmul.mubr.msk.f32.vlgmr.msra.gmra.mxu0 %vm210_vm1, %v609_v46  ;;  %v1039_v46 = vld [vmem:[%s4112_s6 + $0x10] sm:$0xff] }
 0x747   :  { %v3694_v47 = vpop.f32.mrf.mxu0 }
 0x749   :  { %v3696_v48 = vpop.f32.mrf.mxu0 }
 0x74f   :  { %v3140_v49 = vpop.f32.mrf.mxu0 }
 0x750   :  { %v694_v50 = vadd.f32 %v3140_v49, %v3631_v43 }
 0x751   :  { %v688_v51 = vpop.f32.mrf.mxu0 }
 0x752   :  { %v689_v52 = vadd.f32 %v688_v51, %v3636_v45  ;;  %v700_v53 = vsel %vm296_vm2, %v694_v50, -inf }
 0x753   :  { %701 = vmax.xlane.f32.xlu1 %v700_v53 }
 0x754   :  { %v697_v54 = vsel %vm296_vm2, %v689_v52, -inf }
 0x755   :  { %698 = vmax.xlane.f32.xlu0 %v697_v54 }
 0x764   :  { %719 = vrot.lane.b32.xlu1 %v3608_v38, %s4137_s28 }
 0x768   :  { %812 = vrot.lane.b32.xlu1 %v3606_v36, %s4135_s29 }
 0x76c   :  { %810 = vrot.lane.b32.xlu1 %v3608_v38, %s4135_s29 }
 0x770   :  { %808 = vrot.lane.b32.xlu1 %v3624_v42, %s4133_s30 }
 0x7dc   :  { %v702_v55 = vpop.xlane.xlu1 %701 }
 0x7dd   :  { %v704_v56 = vsub.f32 %v694_v50, %v702_v55 }
 0x7de   :  { %v699_v57 = vpop.xlane.xlu0 %698 }
 0x7df   :  { %v707_v58 = vmul.f32 1.442695, %v704_v56  ;;  %v703_v59 = vsub.f32 %v689_v52, %v699_v57 }
 0x7e0   :  { %v720_v2 = vpop.permute.xlu1 %719 }
 0x7e1   :  { %3359 = vpow2.f32 %v707_v58  ;;  %v705_v60 = vmul.f32 1.442695, %v703_v59 }
 0x7e3   :  { %3361 = vpow2.f32 %v705_v60 }
 0x7e4   :  { %v813_v4 = vpop.permute.xlu1 %812 }
 0x7e8   :  { %v811_v11 = vpop.permute.xlu1 %810 }
 0x7ec   :  { %v809_v12 = vpop.permute.xlu1 %808 }
 0x7ee   :  { %v3360_v61 = vpop.eup %3359 }
 0x7ef   :  { %v712_v62 = vsel %vm296_vm2, %v3360_v61, 0.0 }
 0x7f0   :  { %v3362_v63 = vpop.eup %3361  ;;  %713 = vadd.xlane.f32.xlu0 %v712_v62 }
 0x7f1   :  { %v709_v0 = vsel %vm296_vm2, %v3362_v63, 0.0 }
 0x7f4   :  { %710 = vadd.xlane.f32.xlu0 %v709_v0 }
 0x80a   :  { %721 = vrot.lane.b32.xlu0 %v3606_v36, %s4137_s28 }
 0x80e   :  { %806 = vrot.lane.b32.xlu0 %v3615_v39, %s4133_s30 }
 0x879   :  { %v714_v42 = vpop.xlane.xlu0 %713 }
 0x87a   :  { %3363 = vrcp.f32 %v714_v42 }
 0x87d   :  { %v711_v1 = vpop.xlane.xlu0 %710 }
 0x87e   :  { %3365 = vrcp.f32 %v711_v1 }
 0x881   :  { %v722_v3 = vpop.permute.xlu0 %721 }
 0x882   :  { %3141 = vmatprep.subr.mxu1 %v722_v3 }
 0x883   :  { %3142 = vmatpush3.msra.mxu1 %v722_v3 }
 0x884   :  { %3143 = vmatprep.subr.mxu1 %v720_v2 }
 0x885   :  { %3144 = vmatpush3.msra.mxu1 %v720_v2  ;;  %v807_v39 = vpop.permute.xlu0 %806 }
 0x886   :  { %3148 = vmatprep.subr.msk.mxu1 %vm210_vm1, %v813_v4 }
 0x887   :  { %v3364_v5 = vpop.eup %3363 }
 0x888   :  { %v718_v8 = vmul.f32 %v3364_v5, %v3360_v61 }
 0x88b   :  { %v3366_v6 = vpop.eup %3365 }
 0x88c   :  { %v717_v7 = vmul.f32 %v3366_v6, %v3362_v63 }
 0x88e   :  { %3145 = vmatprep.mubr.msk.f32.mxu1 %vm296_vm2, %v717_v7 }
 0x88f   :  { %3146 = vmatmul.mubr.msk.f32.vlgmr.msra.gmra.mxu1 %vm296_vm2, %v718_v8 }
 0x890   :  { %3149 = vmatpush3.xpose.msk.msra.mxu1 %vm210_vm1, %v813_v4  ;;  %3152 = vmatprep.mubr.msk.f32.mxu1 %vm210_vm1, %v807_v39 }
 0x891   :  { %3150 = vmatprep.subr.msk.mxu1 %vm210_vm1, %v811_v11 }
 0x894   :  { %3151 = vmatpush3.xpose.msk.msra.mxu1 %vm210_vm1, %v811_v11 }
 0x897   :  { %3153 = vmatmul.mubr.msk.f32.vlgmr.msra.gmra.mxu1 %vm210_vm1, %v809_v12 }
 0x94f   :  { %v3147_v13 = vpop.f32.mrf.mxu1 }
 0x951   :  { %v797_v14 = vpop.f32.mrf.mxu1 }
 0x957   :  { %v3154_v15 = vpop.f32.mrf.mxu1 }
 0x958   :  { %v894_v16 = vadd.f32 %v3154_v15, %v3631_v43  ;;  %v1177_v15 = vld [vmem:[%s4116_s10 + $0x10] sm:$0xff] }
 0x959   :  { %v888_v17 = vpop.f32.mrf.mxu1 }
 0x95a   :  { %v889_v18 = vadd.f32 %v888_v17, %v3636_v45  ;;  %v900_v19 = vsel %vm296_vm2, %v894_v16, -inf  ;;  %v1175_v17 = vld [vmem:[%s4116_s10] sm:$0xff] }
 0x95b   :  { %901 = vmax.xlane.f32.xlu1 %v900_v19 }
 0x95c   :  { %v897_v20 = vsel %vm296_vm2, %v889_v18, -inf }
 0x95d   :  { %898 = vmax.xlane.f32.xlu0 %v897_v20 }
 0x96c   :  { %919 = vrot.lane.b32.xlu1 %v3608_v38, %s4131_s0 }
 0x970   :  { %1008 = vrot.lane.b32.xlu1 %v3696_v48, %s4129_s19  ;;  %v1037_v48 = vld [vmem:[%s4112_s6] sm:$0xff] }
 0x974   :  { %1010 = vrot.lane.b32.xlu1 %v3694_v47, %s4129_s19  ;;  %v1038_v47 = vld [vmem:[%s4112_s6 + $0x8] sm:$0xff] }
 0x978   :  { %1018 = vrot.lane.b32.xlu1 %v3147_v13, %s4127_s1 }
 0x9e4   :  { %v902_v21 = vpop.xlane.xlu1 %901 }
 0x9e5   :  { %v904_v22 = vsub.f32 %v894_v16, %v902_v21  ;;  %v1176_v16 = vld [vmem:[%s4116_s10 + $0x8] sm:$0xff] }
 0x9e6   :  { %v899_v23 = vpop.xlane.xlu0 %898 }
 0x9e7   :  { %v907_v24 = vmul.f32 1.442695, %v904_v22  ;;  %v903_v25 = vsub.f32 %v889_v18, %v899_v23 }
 0x9e8   :  { %v920_v35 = vpop.permute.xlu1 %919 }
 0x9e9   :  { %3367 = vpow2.f32 %v907_v24  ;;  %v905_v26 = vmul.f32 1.442695, %v903_v25  ;;  %v2890_v25 = vld [vmem:[%s4114_s8] ss:$0 sm:$0xff] }
 0x9eb   :  { %3369 = vpow2.f32 %v905_v26 }
 0x9ec   :  { %v1009_v51 = vpop.permute.xlu1 %1008 }
 0x9ed   :  { %v1030_v55 = vsel %vm210_vm1, %v3666_v10, %v1009_v51  ;;  %v2887_v10 = vld [vmem:[%s4113_s7] ss:$0 sm:$0xff] }
 0x9f0   :  { %v1011_v52 = vpop.permute.xlu1 %1010 }
 0x9f1   :  { %v1031_v57 = vsel %vm210_vm1, %v3664_v9, %v1011_v52 }
 0x9f4   :  { %v1019_v53 = vpop.permute.xlu1 %1018 }
 0x9f5   :  { %v1033_v60 = vsel %vm296_vm2, %v1031_v57, %v1019_v53 }
 0x9f6   :  { %v3368_v27 = vpop.eup %3367 }
 0x9f7   :  { %v912_v38 = vsel %vm296_vm2, %v3368_v27, 0.0 }
 0x9f8   :  { %v3370_v28 = vpop.eup %3369  ;;  %913 = vadd.xlane.f32.xlu0 %v912_v38 }
 0x9f9   :  { %v909_v29 = vsel %vm296_vm2, %v3370_v28, 0.0 }
 0x9fc   :  { %910 = vadd.xlane.f32.xlu0 %v909_v29 }
 0xa12   :  { %921 = vrot.lane.b32.xlu0 %v3606_v36, %s4131_s0  ;;  %v1040_v36 = vld [vmem:[%s4112_s6 + $0x18] sm:$0xff] }
 0xa16   :  { %1016 = vrot.lane.b32.xlu0 %v797_v14, %s4127_s1 }
 0xa81   :  { %v914_v30 = vpop.xlane.xlu0 %913 }
 0xa82   :  { %3371 = vrcp.f32 %v914_v30 }
 0xa85   :  { %v911_v32 = vpop.xlane.xlu0 %910 }
 0xa86   :  { %3373 = vrcp.f32 %v911_v32 }
 0xa89   :  { %v922_v34 = vpop.permute.xlu0 %921 }
 0xa8a   :  { %3155 = vmatprep.subr.mxu0 %v922_v34 }
 0xa8b   :  { %3156 = vmatpush3.msra.mxu0 %v922_v34 }
 0xa8c   :  { %3157 = vmatprep.subr.mxu0 %v920_v35 }
 0xa8d   :  { %3158 = vmatpush3.msra.mxu0 %v920_v35  ;;  %v1017_v54 = vpop.permute.xlu0 %1016  ;;  %v1292_v35 = vld [vmem:[%s4118_s12 + $0x38] sm:$0xff] }
 0xa8e   :  { %3162 = vmatprep.subr.mxu0 %v1040_v36  ;;  %v1032_v58 = vsel %vm296_vm2, %v1030_v55, %v1017_v54 }
 0xa8f   :  { %v3372_v37 = vpop.eup %3371 }
 0xa90   :  { %v918_v44 = vmul.f32 %v3372_v37, %v3368_v27  ;;  %v2891_v27 = vld [vmem:[%s4115_s9] ss:$0 sm:$0xff]  ;;  %v1291_v37 = vld [vmem:[%s4118_s12 + $0x30] sm:$0xff] }
 0xa93   :  { %v3374_v40 = vpop.eup %3373 }
 0xa94   :  { %v917_v41 = vmul.f32 %v3374_v40, %v3370_v28  ;;  %v1290_v40 = vld [vmem:[%s4118_s12 + $0x28] sm:$0xff] }
 0xa96   :  { %3159 = vmatprep.mubr.msk.f32.mxu0 %vm296_vm2, %v917_v41  ;;  %v1289_v41 = vld [vmem:[%s4118_s12 + $0x20] sm:$0xff] }
 0xa97   :  { %3160 = vmatmul.mubr.msk.f32.vlgmr.msra.gmra.mxu0 %vm296_vm2, %v918_v44  ;;  %v1288_v44 = vld [vmem:[%s4118_s12 + $0x18] sm:$0xff] }
 0xa98   :  { %3163 = vmatpush3.msra.mxu0 %v1040_v36  ;;  %v1287_v36 = vld [vmem:[%s4118_s12 + $0x10] sm:$0xff] }
 0xa99   :  { %3164 = vmatprep.subr.mxu0 %v1039_v46 }
 0xa9a   :  { %3165 = vmatpush3.msra.mxu0 %v1039_v46  ;;  %v1286_v46 = vld [vmem:[%s4118_s12 + $0x8] sm:$0xff] }
 0xa9b   :  { %3166 = vmatprep.subr.mxu0 %v1038_v47 }
 0xa9c   :  { %3167 = vmatpush3.msra.mxu0 %v1038_v47  ;;  %v1285_v47 = vld [vmem:[%s4118_s12] sm:$0xff] }
 0xa9d   :  { %3168 = vmatprep.subr.mxu0 %v1037_v48 }
 0xa9e   :  { %3169 = vmatpush3.msra.mxu0 %v1037_v48  ;;  %v2892_v48 = vld [vmem:[%s4117_s11] ss:$0 sm:$0xff] }
 0xa9f   :  { %3184 = vmatprep.subr.mxu0 %v1292_v35 }
 0xb57   :  { %v3161_v49 = vpop.f32.mrf.mxu0 }
 0xb58   :  { %1026 = vrot.lane.b32.xlu1 %v3161_v49, %s4139_s21 }
 0xb59   :  { %v997_v50 = vpop.f32.mrf.mxu0 }
 0xb5a   :  { %1024 = vrot.lane.b32.xlu0 %v997_v50, %s4139_s21 }
 0xbca   :  { %v1027_v56 = vpop.permute.xlu1 %1026 }
 0xbcb   :  { %v1036_v62 = vsel %vm1034_vm3, %v1033_v60, %v1027_v56 }
 0xbcc   :  { %v1025_v59 = vpop.permute.xlu0 %1024 }
 0xbcd   :  { %v1035_v61 = vsel %vm1034_vm3, %v1032_v58, %v1025_v59 }
 0xbce   :  { %3170 = vmatprep.mubr.msk.f32.mxu0 %vm66_vm0, %v1035_v61 }
 0xbcf   :  { %3171 = vmatmul.mubr.msk.f32.vlgmr.msra.gmra.mxu0 %vm66_vm0, %v1036_v62 }
 0xbd0   :  { %3185 = vmatpush3.msra.mxu0 %v1292_v35 }
 0xbd1   :  { %3186 = vmatprep.subr.mxu0 %v1291_v37 }
 0xbd2   :  { %3187 = vmatpush3.msra.mxu0 %v1291_v37 }
 0xbd3   :  { %3188 = vmatprep.subr.mxu0 %v1290_v40 }
 0xbd4   :  { %3189 = vmatpush3.msra.mxu0 %v1290_v40 }
 0xbd5   :  { %3190 = vmatprep.subr.mxu0 %v1289_v41 }
 0xbd6   :  { %3191 = vmatpush3.msra.mxu0 %v1289_v41 }
 0xbd7   :  { %3192 = vmatprep.subr.mxu0 %v1288_v44 }
 0xbd8   :  { %3193 = vmatpush3.msra.mxu0 %v1288_v44  ;;  %v2899_v44 = vld [vmem:[%s4121_s15] ss:$0 sm:$0xff] }
 0xbd9   :  { %3194 = vmatprep.subr.mxu0 %v1287_v36 }
 0xbda   :  { %3195 = vmatpush3.msra.mxu0 %v1287_v36 }
 0xbdb   :  { %3196 = vmatprep.subr.mxu0 %v1286_v46 }
 0xbdc   :  { %3197 = vmatpush3.msra.mxu0 %v1286_v46 }
 0xbdd   :  { %3198 = vmatprep.subr.mxu0 %v1285_v47 }
 0xbde   :  { %3199 = vmatpush3.msra.mxu0 %v1285_v47 }
 0xc8f   :  { %v3172_v63 = vpop.f32.mrf.mxu0 }
 0xc90   :  { %v1126_v0 = vadd.f32 %v3172_v63, %v2887_v10 }
 0xc91   :  { %v1120_v9 = vpop.f32.mrf.mxu0 }
 0xc92   :  { %v1121_v42 = vadd.f32 %v2887_v10, %v1120_v9  ;;  %v1130_v1 = vadd.f32 %v1126_v0, %v3599_v33 }
 0xc94   :  { %v1136_v2 = vsel %vm66_vm0, %v1130_v1, 0.0  ;;  %v1129_v3 = vadd.f32 %v1121_v42, %v3595_v31  ;;  %v1178_v31 = vld [vmem:[%s4116_s10 + $0x18] sm:$0xff] }
 0xc95   :  { %1137 = vadd.xlane.f32.xlu1 %v1136_v2  ;;  %3173 = vmatprep.subr.mxu1 %v1178_v31 }
 0xc96   :  { %v1133_v4 = vsel %vm66_vm0, %v1129_v3, 0.0  ;;  %3174 = vmatpush3.msra.mxu1 %v1178_v31 }
 0xc97   :  { %1134 = vadd.xlane.f32.xlu0 %v1133_v4  ;;  %3175 = vmatprep.subr.mxu1 %v1177_v15  ;;  %v2895_v4 = vld [vmem:[%s4119_s13] ss:$0 sm:$0xff] }
 0xc98   :  { %3176 = vmatpush3.msra.mxu1 %v1177_v15 }
 0xc99   :  { %3177 = vmatprep.subr.mxu1 %v1176_v16 }
 0xc9a   :  { %3178 = vmatpush3.msra.mxu1 %v1176_v16 }
 0xc9b   :  { %3179 = vmatprep.subr.mxu1 %v1175_v17 }
 0xc9c   :  { %3180 = vmatpush3.msra.mxu1 %v1175_v17 }
 0xd1e   :  { %v1138_v5 = vpop.xlane.xlu1 %1137 }
 0xd1f   :  { %v1140_v6 = vmul.f32 0.03125, %v1138_v5 }
 0xd20   :  { %v1135_v7 = vpop.xlane.xlu0 %1134 }
 0xd21   :  { %v1139_v8 = vmul.f32 0.03125, %v1135_v7  ;;  %v1142_v39 = vsub.f32 %v1130_v1, %v1140_v6 }
 0xd23   :  { %v1141_v11 = vsub.f32 %v1129_v3, %v1139_v8  ;;  %v1144_v14 = vmul.f32 %v1142_v39, %v1142_v39 }
 0xd25   :  { %v1143_v12 = vmul.f32 %v1141_v11, %v1141_v11  ;;  %v1148_v33 = vsel %vm66_vm0, %v1144_v14, 0.0 }
 0xd27   :  { %v1145_v13 = vsel %vm66_vm0, %v1143_v12, 0.0 }
 0xd28   :  { %1146 = vadd.xlane.f32.xlu0 %v1145_v13 }
 0xd2c   :  { %1149 = vadd.xlane.f32.xlu0 %v1148_v33 }
 0xdb1   :  { %v1147_v18 = vpop.xlane.xlu0 %1146 }
 0xdb2   :  { %v1151_v19 = vmul.f32 0.03125, %v1147_v18 }
 0xdb4   :  { %v1153_v20 = vadd.f32 1e-12, %v1151_v19 }
 0xdb5   :  { %v1150_v21 = vpop.xlane.xlu0 %1149 }
 0xdb6   :  { %3375 = vrsqrt.f32 %v1153_v20  ;;  %v1152_v22 = vmul.f32 0.03125, %v1150_v21 }
 0xdb8   :  { %v1154_v23 = vadd.f32 1e-12, %v1152_v22  ;;  %v2903_v22 = vld [vmem:[%s4110_s4 + $0x38] sm:$0xff] }
 0xdb9   :  { %3203 = vmatprep.subr.mxu1 %v2903_v22 }
 0xdba   :  { %3377 = vrsqrt.f32 %v1154_v23  ;;  %v2902_v23 = vld [vmem:[%s4110_s4 + $0x30] sm:$0xff] }
 0xdc3   :  { %v3376_v24 = vpop.eup %3375 }
 0xdc4   :  { %v1157_v26 = vmul.f32 %v3376_v24, %v1141_v11  ;;  %v2901_v24 = vld [vmem:[%s4110_s4 + $0x28] sm:$0xff] }
 0xdc6   :  { %v1165_v38 = vmul.f32 %v2890_v25, %v1157_v26 }
 0xdc7   :  { %v3378_v28 = vpop.eup %3377 }
 0xdc8   :  { %v1158_v29 = vmul.f32 %v3378_v28, %v1142_v39  ;;  %v3793_v30 = vadd.f32 %v2891_v27, %v1165_v38 }
 0xdca   :  { %v1166_v32 = vmul.f32 %v2890_v25, %v1158_v29  ;;  %3181 = vmatprep.mubr.msk.f32.mxu1 %vm66_vm0, %v3793_v30  ;;  %v2900_v25 = vld [vmem:[%s4110_s4 + $0x20] sm:$0xff] }
 0xdcc   :  { %v1174_v34 = vadd.f32 %v2891_v27, %v1166_v32 }
 0xdce   :  { %3182 = vmatmul.mubr.msk.f32.vlgmr.msra.gmra.mxu1 %vm66_vm0, %v1174_v34 }
 0xdcf   :  { %3204 = vmatpush3.msra.mxu1 %v2903_v22 }
 0xdd0   :  { %3205 = vmatprep.subr.mxu1 %v2902_v23 }
 0xdd1   :  { %3206 = vmatpush3.msra.mxu1 %v2902_v23 }
 0xdd2   :  { %3207 = vmatprep.subr.mxu1 %v2901_v24 }
 0xdd3   :  { %3208 = vmatpush3.msra.mxu1 %v2901_v24 }
 0xdd4   :  { %3209 = vmatprep.subr.mxu1 %v2900_v25 }
 0xdd5   :  { %3210 = vmatpush3.msra.mxu1 %v2900_v25 }
 0xe8e   :  { %v3183_v49 = vpop.f32.mrf.mxu1 }
 0xe8f   :  { %v1264_v50 = vadd.f32 %v3183_v49, %v2892_v48 }
 0xe90   :  { %v1258_v51 = vpop.f32.mrf.mxu1 }
 0xe91   :  { %v1270_v52 = vmul.f32 0.044715, %v1264_v50  ;;  %v1259_v53 = vadd.f32 %v2892_v48, %v1258_v51  ;;  %v1268_v1 = vmul.f32 0.5, %v1264_v50  ;;  %v2905_v48 = vld [vmem:[%s4111_s5 + $0x1] ss:$0 sm:$0xff]  ;;  %s4153_s5 = smov 24  }
 0xe93   :  { %v1272_v54 = vmul.f32 %v1270_v52, %v1264_v50  ;;  %v1269_v55 = vmul.f32 0.044715, %v1259_v53  ;;  %v1267_v9 = vmul.f32 0.5, %v1259_v53 }
 0xe95   :  { %v1274_v56 = vmul.f32 %v1272_v54, %v1264_v50  ;;  %v1271_v57 = vmul.f32 %v1269_v55, %v1259_v53 }
 0xe97   :  { %v1276_v58 = vadd.f32 %v1274_v56, %v1264_v50  ;;  %v1273_v59 = vmul.f32 %v1271_v57, %v1259_v53 }
 0xe99   :  { %v1278_v60 = vmul.f32 0.7978846, %v1276_v58  ;;  %v1275_v61 = vadd.f32 %v1273_v59, %v1259_v53 }
 0xe9b   :  { %3379 = vtanh.f32 %v1278_v60  ;;  %v1277_v62 = vmul.f32 0.7978846, %v1275_v61 }
 0xe9d   :  { %3381 = vtanh.f32 %v1277_v62 }
 0xea8   :  { %v3380_v10 = vpop.eup %3379 }
 0xea9   :  { %v1282_v0 = vadd.f32 1.0, %v3380_v10 }
 0xeaa   :  { %v3382_v63 = vpop.eup %3381 }
 0xeab   :  { %v1281_v42 = vadd.f32 1.0, %v3382_v63  ;;  %v1284_v3 = vmul.f32 %v1282_v0, %v1268_v1 }
 0xead   :  { %v1283_v2 = vmul.f32 %v1281_v42, %v1267_v9 }
 0xeaf   :  { %3200 = vmatprep.mubr.msk.f32.mxu0 %vm1300_vm4, %v1283_v2 }
 0xeb0   :  { %3201 = vmatmul.mubr.msk.f32.vlgmr.msra.gmra.mxu0 %vm1300_vm4, %v1284_v3 }
 0xf70   :  { %v3202_v5 = vpop.f32.mrf.mxu0 }
 0xf71   :  { %v1379_v6 = vadd.f32 %v3202_v5, %v2895_v4 }
 0xf72   :  { %v1373_v7 = vpop.f32.mrf.mxu0 }
 0xf73   :  { %v1374_v8 = vadd.f32 %v2895_v4, %v1373_v7  ;;  %v1383_v39 = vadd.f32 %v1379_v6, %v1174_v34  ;;  %v2898_v34 = vld [vmem:[%s4120_s14] ss:$0 sm:$0xff] }
 0xf75   :  { %v1389_v11 = vsel %vm66_vm0, %v1383_v39, 0.0  ;;  %v1382_v12 = vadd.f32 %v1374_v8, %v3793_v30 }
 0xf76   :  { %1390 = vadd.xlane.f32.xlu1 %v1389_v11 }
 0xf77   :  { %v1386_v13 = vsel %vm66_vm0, %v1382_v12, 0.0 }
 0xf78   :  { %1387 = vadd.xlane.f32.xlu0 %v1386_v13 }
 0xfff   :  { %v1391_v14 = vpop.xlane.xlu1 %1390 }
0x1000   :  { %v1393_v33 = vmul.f32 0.03125, %v1391_v14 }
0x1001   :  { %v1388_v31 = vpop.xlane.xlu0 %1387 }
0x1002   :  { %v1395_v15 = vsub.f32 %v1383_v39, %v1393_v33  ;;  %v1392_v16 = vmul.f32 0.03125, %v1388_v31 }
0x1004   :  { %v1394_v17 = vsub.f32 %v1382_v12, %v1392_v16  ;;  %v1397_v18 = vmul.f32 %v1395_v15, %v1395_v15 }
0x1006   :  { %v1401_v19 = vsel %vm66_vm0, %v1397_v18, 0.0  ;;  %v1396_v20 = vmul.f32 %v1394_v17, %v1394_v17 }
0x1007   :  { %1402 = vadd.xlane.f32.xlu1 %v1401_v19 }
0x1008   :  { %v1398_v21 = vsel %vm66_vm0, %v1396_v20, 0.0 }
0x1009   :  { %1399 = vadd.xlane.f32.xlu0 %v1398_v21 }
0x1090   :  { %v1403_v26 = vpop.xlane.xlu1 %1402 }
0x1091   :  { %v1405_v27 = vmul.f32 0.03125, %v1403_v26 }
0x1092   :  { %v1400_v38 = vpop.xlane.xlu0 %1399 }
0x1093   :  { %v1407_v28 = vadd.f32 1e-12, %v1405_v27  ;;  %v1404_v29 = vmul.f32 0.03125, %v1400_v38 }
0x1095   :  { %3383 = vrsqrt.f32 %v1407_v28  ;;  %v1406_v30 = vadd.f32 1e-12, %v1404_v29 }
0x1097   :  { %3385 = vrsqrt.f32 %v1406_v30 }
0x10a2   :  { %v3384_v32 = vpop.eup %3383 }
0x10a3   :  { %v1411_v35 = vmul.f32 %v3384_v32, %v1395_v15 }
0x10a4   :  { %v3386_v37 = vpop.eup %3385 }
0x10a5   :  { %v1410_v40 = vmul.f32 %v3386_v37, %v1394_v17  ;;  %v1419_v41 = vmul.f32 %v2898_v34, %v1411_v35 }
0x10a7   :  { %v1418_v36 = vmul.f32 %v2898_v34, %v1410_v40  ;;  %v3855_v47 = vadd.f32 %v2899_v44, %v1419_v41 }
0x10a9   :  { %v3853_v46 = vadd.f32 %v2899_v44, %v1418_v36 }
0x10ab   :  { %3211 = vmatprep.mubr.msk.f32.mxu1 %vm66_vm0, %v3853_v46 }
0x10ac   :  { %3212 = vmatmul.mubr.msk.f32.vlgmr.msra.gmra.mxu1 %vm66_vm0, %v3855_v47 }
0x116c   :  { %v3213_v49 = vpop.f32.mrf.mxu1 }
0x116d   :  { %v3864_v50 = vadd.f32 %v3213_v49, %v2905_v48 }
0x116e   :  { %v1513_v51 = vpop.f32.mrf.mxu1 }
0x116f   :  { %v3866_v52 = vadd.f32 %v2905_v48, %v1513_v51  ;;  %1528 = vrot.lane.b32.xlu0 %v3864_v50, %s3455_s3  ;;  %v3884_v54 = vmul.f32 0.35355338, %v3864_v50 }
0x1171   :  { %1526 = vrot.lane.b32.xlu1 %v3866_v52, %s3455_s3  ;;  %v3873_v53 = vmul.f32 0.35355338, %v3866_v52 }
0x1173   :  { %1724 = vrot.lane.b32.xlu0 %v3873_v53, %s3458_s24  ;;  %3218 = vmatprep.mubr.msk.f32.mxu1 %vm210_vm1, %v3873_v53 }
0x1175   :  { %1730 = vrot.lane.b32.xlu1 %v3864_v50, %s3457_s23 }
0x1179   :  { %1728 = vrot.lane.b32.xlu1 %v3866_v52, %s3457_s23 }
0x117d   :  { %1726 = vrot.lane.b32.xlu1 %v3884_v54, %s3458_s24  ;;  %s4147_s24 = smov 48  }
0x11e1   :  { %v1529_v55 = vpop.permute.xlu0 %1528 }
0x11e2   :  { %3214 = vmatprep.subr.msk.mxu1 %vm210_vm1, %v1529_v55 }
0x11e3   :  { %3215 = vmatpush3.xpose.msk.msra.mxu1 %vm210_vm1, %v1529_v55  ;;  %v1527_v56 = vpop.permute.xlu1 %1526 }
0x11e4   :  { %3216 = vmatprep.subr.msk.mxu1 %vm210_vm1, %v1527_v56 }
0x11e5   :  { %v1725_v58 = vpop.permute.xlu0 %1724 }
0x11e7   :  { %3217 = vmatpush3.xpose.msk.msra.mxu1 %vm210_vm1, %v1527_v56  ;;  %v1731_v57 = vpop.permute.xlu1 %1730 }
0x11e8   :  { %3228 = vmatprep.subr.msk.mxu1 %vm210_vm1, %v1731_v57 }
0x11ea   :  { %3219 = vmatmul.mubr.msk.f32.vlgmr.msra.gmra.mxu1 %vm210_vm1, %v3884_v54 }
0x11eb   :  { %v1729_v59 = vpop.permute.xlu1 %1728  ;;  %3229 = vmatpush3.xpose.msk.msra.mxu1 %vm210_vm1, %v1731_v57  ;;  %3232 = vmatprep.mubr.msk.f32.mxu1 %vm210_vm1, %v1725_v58 }
0x11ec   :  { %3230 = vmatprep.subr.msk.mxu1 %vm210_vm1, %v1729_v59 }
0x11ef   :  { %3231 = vmatpush3.xpose.msk.msra.mxu1 %vm210_vm1, %v1729_v59  ;;  %v1727_v60 = vpop.permute.xlu1 %1726 }
0x11f2   :  { %3233 = vmatmul.mubr.msk.f32.vlgmr.msra.gmra.mxu1 %vm210_vm1, %v1727_v60  ;;  %v3431_v60 = vld [vmem:[%s4146_s20 + $0x8] sm:$0xff] }
0x12aa   :  { %v3220_v61 = vpop.f32.mrf.mxu1 }
0x12ab   :  { %v1612_v62 = vadd.f32 %v3220_v61, %v3631_v43 }
0x12ac   :  { %v1606_v10 = vpop.f32.mrf.mxu1 }
0x12ad   :  { %v1607_v63 = vadd.f32 %v1606_v10, %v3636_v45  ;;  %v1618_v0 = vsel %vm296_vm2, %v1612_v62, -inf  ;;  %v3432_v10 = vld [vmem:[%s4146_s20] sm:$0xff]  ;;  %s4150_s20 = smov 40  }
0x12ae   :  { %1619 = vmax.xlane.f32.xlu1 %v1618_v0 }
0x12af   :  { %v1615_v9 = vsel %vm296_vm2, %v1607_v63, -inf }
0x12b0   :  { %1616 = vmax.xlane.f32.xlu0 %v1615_v9 }
0x12b2   :  { %v3234_v42 = vpop.f32.mrf.mxu1 }
0x12b3   :  { %v1812_v3 = vadd.f32 %v3234_v42, %v3631_v43 }
0x12b4   :  { %v1806_v1 = vpop.f32.mrf.mxu1 }
0x12b5   :  { %v1807_v2 = vadd.f32 %v1806_v1, %v3636_v45  ;;  %v1818_v5 = vsel %vm296_vm2, %v1812_v3, -inf }
0x12b7   :  { %v1815_v4 = vsel %vm296_vm2, %v1807_v2, -inf }
0x12b8   :  { %1816 = vmax.xlane.f32.xlu0 %v1815_v4 }
0x12bc   :  { %1819 = vmax.xlane.f32.xlu0 %v1818_v5 }
0x12bf   :  { %1637 = vrot.lane.b32.xlu1 %v3866_v52, %s3456_s2 }
0x12c3   :  { %1839 = vrot.lane.b32.xlu1 %v3864_v50, %s3459_s25 }
0x12c7   :  { %1837 = vrot.lane.b32.xlu1 %v3866_v52, %s3459_s25  ;;  %s4148_s25 = smov 72  }
0x12d2   :  { %1639 = vrot.lane.b32.xlu0 %v3864_v50, %s3456_s2 }
0x1337   :  { %v1620_v45 = vpop.xlane.xlu1 %1619 }
0x1338   :  { %v1622_v43 = vsub.f32 %v1612_v62, %v1620_v45 }
0x1339   :  { %v1617_v6 = vpop.xlane.xlu0 %1616 }
0x133a   :  { %v1625_v7 = vmul.f32 1.442695, %v1622_v43  ;;  %v1621_v8 = vsub.f32 %v1607_v63, %v1617_v6 }
0x133b   :  { %v1638_v31 = vpop.permute.xlu1 %1637 }
0x133c   :  { %3387 = vpow2.f32 %v1625_v7  ;;  %v1623_v39 = vmul.f32 1.442695, %v1621_v8 }
0x133e   :  { %3389 = vpow2.f32 %v1623_v39 }
0x133f   :  { %v1840_v21 = vpop.permute.xlu1 %1839 }
0x1341   :  { %v1817_v11 = vpop.xlane.xlu0 %1816 }
0x1342   :  { %v1821_v12 = vsub.f32 %v1807_v2, %v1817_v11 }
0x1343   :  { %v1838_v26 = vpop.permute.xlu1 %1837 }
0x1344   :  { %v1823_v13 = vmul.f32 1.442695, %v1821_v12 }
0x1345   :  { %v1820_v14 = vpop.xlane.xlu0 %1819 }
0x1346   :  { %3391 = vpow2.f32 %v1823_v13  ;;  %v1822_v33 = vsub.f32 %v1812_v3, %v1820_v14 }
0x1348   :  { %v1825_v15 = vmul.f32 1.442695, %v1822_v33 }
0x1349   :  { %v3388_v16 = vpop.eup %3387  ;;  %v1640_v17 = vpop.permute.xlu0 %1639 }
0x134a   :  { %3393 = vpow2.f32 %v1825_v15  ;;  %3221 = vmatprep.subr.mxu0 %v1640_v17  ;;  %v1630_v18 = vsel %vm296_vm2, %v3388_v16, 0.0 }
0x134b   :  { %v3390_v19 = vpop.eup %3389  ;;  %1631 = vadd.xlane.f32.xlu1 %v1630_v18  ;;  %3222 = vmatpush3.msra.mxu0 %v1640_v17 }
0x134c   :  { %3223 = vmatprep.subr.mxu0 %v1638_v31  ;;  %v1627_v20 = vsel %vm296_vm2, %v3390_v19, 0.0 }
0x134d   :  { %1628 = vadd.xlane.f32.xlu0 %v1627_v20  ;;  %3224 = vmatpush3.msra.mxu0 %v1638_v31 }
0x134e   :  { %3235 = vmatprep.subr.mxu0 %v1840_v21 }
0x1353   :  { %v3392_v22 = vpop.eup %3391 }
0x1354   :  { %v1827_v23 = vsel %vm296_vm2, %v3392_v22, 0.0 }
0x1355   :  { %1828 = vadd.xlane.f32.xlu0 %v1827_v23 }
0x1357   :  { %v3394_v24 = vpop.eup %3393 }
0x1358   :  { %v1830_v25 = vsel %vm296_vm2, %v3394_v24, 0.0 }
0x1359   :  { %1831 = vadd.xlane.f32.xlu1 %v1830_v25 }
0x136a   :  { %1928 = vrot.lane.b32.xlu1 %v3866_v52, %s3460_s26 }
0x136b   :  { %1930 = vrot.lane.b32.xlu0 %v3864_v50, %s3460_s26  ;;  %s4149_s26 = smov 104  }
0x136e   :  { %1926 = vrot.lane.b32.xlu1 %v3884_v54, %s3461_s27 }
0x136f   :  { %1924 = vrot.lane.b32.xlu0 %v3873_v53, %s3461_s27  ;;  %s4151_s27 = smov 8  }
0x13d4   :  { %v1632_v27 = vpop.xlane.xlu1 %1631 }
0x13d5   :  { %3395 = vrcp.f32 %v1632_v27 }
0x13d6   :  { %v1629_v38 = vpop.xlane.xlu0 %1628 }
0x13d7   :  { %3397 = vrcp.f32 %v1629_v38 }
0x13de   :  { %v1829_v28 = vpop.xlane.xlu0 %1828 }
0x13df   :  { %3399 = vrcp.f32 %v1829_v28 }
0x13e2   :  { %v1832_v29 = vpop.xlane.xlu1 %1831  ;;  %v3396_v30 = vpop.eup %3395 }
0x13e3   :  { %3401 = vrcp.f32 %v1832_v29  ;;  %v1636_v35 = vmul.f32 %v3396_v30, %v3388_v16  ;;  %v1931_v37 = vpop.permute.xlu0 %1930 }
0x13e4   :  { %v3398_v32 = vpop.eup %3397 }
0x13e5   :  { %v1635_v34 = vmul.f32 %v3398_v32, %v3390_v19 }
0x13e6   :  { %v1929_v49 = vpop.permute.xlu1 %1928 }
0x13e7   :  { %3225 = vmatprep.mubr.msk.f32.mxu0 %vm296_vm2, %v1635_v34  ;;  %v1925_v48 = vpop.permute.xlu0 %1924 }
0x13e8   :  { %3226 = vmatmul.mubr.msk.f32.vlgmr.msra.gmra.mxu0 %vm296_vm2, %v1636_v35 }
0x13e9   :  { %3236 = vmatpush3.msra.mxu0 %v1840_v21 }
0x13ea   :  { %3237 = vmatprep.subr.mxu0 %v1838_v26  ;;  %v1927_v51 = vpop.permute.xlu1 %1926 }
0x13eb   :  { %3238 = vmatpush3.msra.mxu0 %v1838_v26 }
0x13ec   :  { %v3400_v40 = vpop.eup %3399  ;;  %3242 = vmatprep.subr.msk.mxu0 %vm210_vm1, %v1931_v37 }
0x13ed   :  { %v1835_v41 = vmul.f32 %v3400_v40, %v3392_v22 }
0x13ef   :  { %3239 = vmatprep.mubr.msk.f32.mxu0 %vm296_vm2, %v1835_v41 }
0x13f0   :  { %v3402_v44 = vpop.eup %3401 }
0x13f1   :  { %v1836_v36 = vmul.f32 %v3402_v44, %v3394_v24 }
0x13f3   :  { %3240 = vmatmul.mubr.msk.f32.vlgmr.msra.gmra.mxu0 %vm296_vm2, %v1836_v36 }
0x13f4   :  { %3243 = vmatpush3.xpose.msk.msra.mxu0 %vm210_vm1, %v1931_v37  ;;  %3246 = vmatprep.mubr.msk.f32.mxu0 %vm210_vm1, %v1925_v48 }
0x13f5   :  { %3244 = vmatprep.subr.msk.mxu0 %vm210_vm1, %v1929_v49 }
0x13f8   :  { %3245 = vmatpush3.xpose.msk.msra.mxu0 %vm210_vm1, %v1929_v49 }
0x13fb   :  { %3247 = vmatmul.mubr.msk.f32.vlgmr.msra.gmra.mxu0 %vm210_vm1, %v1927_v51  ;;  %v2934_v51 = vld [vmem:[%s4112_s6 + $0x30] sm:$0xff] }
0x14a8   :  { %v3938_v55 = vpop.f32.mrf.mxu0 }
0x14aa   :  { %v3940_v56 = vpop.f32.mrf.mxu0 }
0x14b3   :  { %v3942_v57 = vpop.f32.mrf.mxu0 }
0x14b5   :  { %v3944_v58 = vpop.f32.mrf.mxu0 }
0x14bb   :  { %v3248_v59 = vpop.f32.mrf.mxu0 }
0x14bc   :  { %v2012_v61 = vadd.f32 %v3431_v60, %v3248_v59 }
0x14bd   :  { %v2006_v62 = vpop.f32.mrf.mxu0 }
0x14be   :  { %v2007_v63 = vadd.f32 %v3432_v10, %v2006_v62  ;;  %v2018_v0 = vsel %vm296_vm2, %v2012_v61, -inf }
0x14bf   :  { %2019 = vmax.xlane.f32.xlu1 %v2018_v0 }
0x14c0   :  { %v2015_v9 = vsel %vm296_vm2, %v2007_v63, -inf }
0x14c1   :  { %2016 = vmax.xlane.f32.xlu0 %v2015_v9 }
0x14d0   :  { %2037 = vrot.lane.b32.xlu1 %v3866_v52, %s4147_s24 }
0x14d4   :  { %2130 = vrot.lane.b32.xlu1 %v3864_v50, %s4148_s25 }
0x14d8   :  { %2128 = vrot.lane.b32.xlu1 %v3866_v52, %s4148_s25 }
0x14dc   :  { %2126 = vrot.lane.b32.xlu1 %v3884_v54, %s4149_s26 }
0x1548   :  { %v2020_v42 = vpop.xlane.xlu1 %2019 }
0x1549   :  { %v2022_v1 = vsub.f32 %v2012_v61, %v2020_v42 }
0x154a   :  { %v2017_v2 = vpop.xlane.xlu0 %2016 }
0x154b   :  { %v2025_v3 = vmul.f32 1.442695, %v2022_v1  ;;  %v2021_v4 = vsub.f32 %v2007_v63, %v2017_v2 }
0x154c   :  { %v2038_v39 = vpop.permute.xlu1 %2037 }
0x154d   :  { %3403 = vpow2.f32 %v2025_v3  ;;  %v2023_v5 = vmul.f32 1.442695, %v2021_v4 }
0x154f   :  { %3405 = vpow2.f32 %v2023_v5 }
0x1550   :  { %v2131_v12 = vpop.permute.xlu1 %2130 }
0x1554   :  { %v2129_v15 = vpop.permute.xlu1 %2128 }
0x1558   :  { %v2127_v16 = vpop.permute.xlu1 %2126 }
0x155a   :  { %v3404_v45 = vpop.eup %3403 }
0x155b   :  { %v2030_v43 = vsel %vm296_vm2, %v3404_v45, 0.0 }
0x155c   :  { %v3406_v6 = vpop.eup %3405  ;;  %2031 = vadd.xlane.f32.xlu0 %v2030_v43 }
0x155d   :  { %v2027_v7 = vsel %vm296_vm2, %v3406_v6, 0.0 }
0x1560   :  { %2028 = vadd.xlane.f32.xlu0 %v2027_v7 }
0x1576   :  { %2039 = vrot.lane.b32.xlu0 %v3864_v50, %s4147_s24 }
0x157a   :  { %2124 = vrot.lane.b32.xlu0 %v3873_v53, %s4149_s26 }
0x15e5   :  { %v2032_v54 = vpop.xlane.xlu0 %2031 }
0x15e6   :  { %3407 = vrcp.f32 %v2032_v54 }
0x15e9   :  { %v2029_v8 = vpop.xlane.xlu0 %2028 }
0x15ea   :  { %3409 = vrcp.f32 %v2029_v8 }
0x15ed   :  { %v2040_v11 = vpop.permute.xlu0 %2039 }
0x15ee   :  { %3249 = vmatprep.subr.mxu1 %v2040_v11 }
0x15ef   :  { %3250 = vmatpush3.msra.mxu1 %v2040_v11 }
0x15f0   :  { %3251 = vmatprep.subr.mxu1 %v2038_v39 }
0x15f1   :  { %3252 = vmatpush3.msra.mxu1 %v2038_v39  ;;  %v2125_v53 = vpop.permute.xlu0 %2124 }
0x15f2   :  { %3256 = vmatprep.subr.msk.mxu1 %vm210_vm1, %v2131_v12 }
0x15f3   :  { %v3408_v13 = vpop.eup %3407 }
0x15f4   :  { %v2036_v31 = vmul.f32 %v3408_v13, %v3404_v45 }
0x15f7   :  { %v3410_v14 = vpop.eup %3409 }
0x15f8   :  { %v2035_v33 = vmul.f32 %v3410_v14, %v3406_v6 }
0x15fa   :  { %3253 = vmatprep.mubr.msk.f32.mxu1 %vm296_vm2, %v2035_v33 }
0x15fb   :  { %3254 = vmatmul.mubr.msk.f32.vlgmr.msra.gmra.mxu1 %vm296_vm2, %v2036_v31 }
0x15fc   :  { %3257 = vmatpush3.xpose.msk.msra.mxu1 %vm210_vm1, %v2131_v12  ;;  %3260 = vmatprep.mubr.msk.f32.mxu1 %vm210_vm1, %v2125_v53 }
0x15fd   :  { %3258 = vmatprep.subr.msk.mxu1 %vm210_vm1, %v2129_v15 }
0x1600   :  { %3259 = vmatpush3.xpose.msk.msra.mxu1 %vm210_vm1, %v2129_v15 }
0x1603   :  { %3261 = vmatmul.mubr.msk.f32.vlgmr.msra.gmra.mxu1 %vm210_vm1, %v2127_v16 }
0x16bb   :  { %v3255_v17 = vpop.f32.mrf.mxu1 }
0x16bd   :  { %v2115_v18 = vpop.f32.mrf.mxu1 }
0x16c3   :  { %v3262_v19 = vpop.f32.mrf.mxu1 }
0x16c4   :  { %v2212_v20 = vadd.f32 %v3431_v60, %v3262_v19  ;;  %v2944_v19 = vld [vmem:[%s4116_s10 + $0x20] sm:$0xff] }
0x16c5   :  { %v2206_v21 = vpop.f32.mrf.mxu1 }
0x16c6   :  { %v2207_v22 = vadd.f32 %v3432_v10, %v2206_v21  ;;  %v2218_v23 = vsel %vm296_vm2, %v2212_v20, -inf }
0x16c7   :  { %2219 = vmax.xlane.f32.xlu1 %v2218_v23 }
0x16c8   :  { %v2215_v24 = vsel %vm296_vm2, %v2207_v22, -inf }
0x16c9   :  { %2216 = vmax.xlane.f32.xlu0 %v2215_v24 }
0x16d8   :  { %2237 = vrot.lane.b32.xlu1 %v3866_v52, %s4150_s20 }
0x16dc   :  { %2326 = vrot.lane.b32.xlu1 %v3944_v58, %s4151_s27  ;;  %v2932_v58 = vld [vmem:[%s4112_s6 + $0x20] sm:$0xff] }
0x16e0   :  { %2328 = vrot.lane.b32.xlu1 %v3942_v57, %s4151_s27  ;;  %v2933_v57 = vld [vmem:[%s4112_s6 + $0x28] sm:$0xff] }
0x16e4   :  { %2336 = vrot.lane.b32.xlu1 %v3255_v17, %s4152_s22  ;;  %v2946_v17 = vld [vmem:[%s4116_s10 + $0x30] sm:$0xff] }
0x1750   :  { %v2220_v25 = vpop.xlane.xlu1 %2219 }
0x1751   :  { %v2222_v26 = vsub.f32 %v2212_v20, %v2220_v25 }
0x1752   :  { %v2217_v27 = vpop.xlane.xlu0 %2216 }
0x1753   :  { %v2225_v38 = vmul.f32 1.442695, %v2222_v26  ;;  %v2221_v28 = vsub.f32 %v2207_v22, %v2217_v27  ;;  %v2942_v27 = vld [vmem:[%s4114_s8 + $0x1] ss:$0 sm:$0xff] }
0x1754   :  { %v2238_v41 = vpop.permute.xlu1 %2237 }
0x1755   :  { %3411 = vpow2.f32 %v2225_v38  ;;  %v2223_v29 = vmul.f32 1.442695, %v2221_v28  ;;  %v2943_v28 = vld [vmem:[%s4115_s9 + $0x1] ss:$0 sm:$0xff] }
0x1757   :  { %3413 = vpow2.f32 %v2223_v29 }
0x1758   :  { %v2327_v61 = vpop.permute.xlu1 %2326 }
0x1759   :  { %v2348_v0 = vsel %vm210_vm1, %v3940_v56, %v2327_v61  ;;  %v2937_v56 = vld [vmem:[%s4113_s7 + $0x1] ss:$0 sm:$0xff] }
0x175c   :  { %v2329_v62 = vpop.permute.xlu1 %2328 }
0x175d   :  { %v2349_v42 = vsel %vm210_vm1, %v3938_v55, %v2329_v62 }
0x1760   :  { %v2337_v10 = vpop.permute.xlu1 %2336 }
0x1761   :  { %v2351_v3 = vsel %vm296_vm2, %v2349_v42, %v2337_v10 }
0x1762   :  { %v3412_v30 = vpop.eup %3411 }
0x1763   :  { %v2230_v32 = vsel %vm296_vm2, %v3412_v30, 0.0 }
0x1764   :  { %v3414_v52 = vpop.eup %3413  ;;  %2231 = vadd.xlane.f32.xlu0 %v2230_v32 }
0x1765   :  { %v2227_v34 = vsel %vm296_vm2, %v3414_v52, 0.0 }
0x1768   :  { %2228 = vadd.xlane.f32.xlu0 %v2227_v34 }
0x177e   :  { %2239 = vrot.lane.b32.xlu0 %v3864_v50, %s4150_s20  ;;  %v2935_v50 = vld [vmem:[%s4112_s6 + $0x38] sm:$0xff] }
0x1782   :  { %2334 = vrot.lane.b32.xlu0 %v2115_v18, %s4152_s22  ;;  %v2945_v18 = vld [vmem:[%s4116_s10 + $0x28] sm:$0xff] }
0x17ed   :  { %v2232_v35 = vpop.xlane.xlu0 %2231 }
0x17ee   :  { %3415 = vrcp.f32 %v2232_v35 }
0x17f1   :  { %v2229_v37 = vpop.xlane.xlu0 %2228 }
0x17f2   :  { %3417 = vrcp.f32 %v2229_v37  ;;  %v2959_v37 = vld [vmem:[%s4118_s12 + $0x78] sm:$0xff] }
0x17f5   :  { %v2240_v40 = vpop.permute.xlu0 %2239 }
0x17f6   :  { %3263 = vmatprep.subr.mxu0 %v2240_v40 }
0x17f7   :  { %3264 = vmatpush3.msra.mxu0 %v2240_v40  ;;  %v2958_v40 = vld [vmem:[%s4118_s12 + $0x70] sm:$0xff] }
0x17f8   :  { %3265 = vmatprep.subr.mxu0 %v2238_v41 }
0x17f9   :  { %3266 = vmatpush3.msra.mxu0 %v2238_v41  ;;  %v2335_v63 = vpop.permute.xlu0 %2334  ;;  %v2957_v41 = vld [vmem:[%s4118_s12 + $0x68] sm:$0xff] }
0x17fa   :  { %3270 = vmatprep.subr.mxu0 %v2935_v50  ;;  %v2350_v1 = vsel %vm296_vm2, %v2348_v0, %v2335_v63 }
0x17fb   :  { %v3416_v44 = vpop.eup %3415 }
0x17fc   :  { %v2236_v49 = vmul.f32 %v3416_v44, %v3412_v30  ;;  %v2956_v44 = vld [vmem:[%s4118_s12 + $0x60] sm:$0xff] }
0x17ff   :  { %v3418_v36 = vpop.eup %3417 }
0x1800   :  { %v2235_v48 = vmul.f32 %v3418_v36, %v3414_v52  ;;  %v2955_v36 = vld [vmem:[%s4118_s12 + $0x58] sm:$0xff] }
0x1802   :  { %3267 = vmatprep.mubr.msk.f32.mxu0 %vm296_vm2, %v2235_v48  ;;  %v2954_v48 = vld [vmem:[%s4118_s12 + $0x50] sm:$0xff] }
0x1803   :  { %3268 = vmatmul.mubr.msk.f32.vlgmr.msra.gmra.mxu0 %vm296_vm2, %v2236_v49  ;;  %v2953_v49 = vld [vmem:[%s4118_s12 + $0x48] sm:$0xff] }
0x1804   :  { %3271 = vmatpush3.msra.mxu0 %v2935_v50  ;;  %v2952_v50 = vld [vmem:[%s4118_s12 + $0x40] sm:$0xff] }
0x1805   :  { %3272 = vmatprep.subr.mxu0 %v2934_v51 }
0x1806   :  { %3273 = vmatpush3.msra.mxu0 %v2934_v51  ;;  %v2949_v51 = vld [vmem:[%s4117_s11 + $0x1] ss:$0 sm:$0xff] }
0x1807   :  { %3274 = vmatprep.subr.mxu0 %v2933_v57 }
0x1808   :  { %3275 = vmatpush3.msra.mxu0 %v2933_v57 }
0x1809   :  { %3276 = vmatprep.subr.mxu0 %v2932_v58 }
0x180a   :  { %3277 = vmatpush3.msra.mxu0 %v2932_v58 }
0x180b   :  { %3292 = vmatprep.subr.mxu0 %v2959_v37 }
0x18c3   :  { %v3269_v59 = vpop.f32.mrf.mxu0 }
0x18c4   :  { %2344 = vrot.lane.b32.xlu1 %v3269_v59, %s4153_s5 }
0x18c5   :  { %v2315_v60 = vpop.f32.mrf.mxu0 }
0x18c6   :  { %2342 = vrot.lane.b32.xlu0 %v2315_v60, %s4153_s5 }
0x1936   :  { %v2345_v9 = vpop.permute.xlu1 %2344 }
0x1937   :  { %v2353_v5 = vsel %vm1034_vm3, %v2351_v3, %v2345_v9 }
0x1938   :  { %v2343_v2 = vpop.permute.xlu0 %2342 }
0x1939   :  { %v2352_v4 = vsel %vm1034_vm3, %v2350_v1, %v2343_v2 }
0x193a   :  { %3278 = vmatprep.mubr.msk.f32.mxu0 %vm66_vm0, %v2352_v4 }
0x193b   :  { %3279 = vmatmul.mubr.msk.f32.vlgmr.msra.gmra.mxu0 %vm66_vm0, %v2353_v5 }
0x193c   :  { %3293 = vmatpush3.msra.mxu0 %v2959_v37 }
0x193d   :  { %3294 = vmatprep.subr.mxu0 %v2958_v40 }
0x193e   :  { %3295 = vmatpush3.msra.mxu0 %v2958_v40  ;;  %v2967_v40 = vld [vmem:[%s4121_s15 + $0x1] ss:$0 sm:$0xff] }
0x193f   :  { %3296 = vmatprep.subr.mxu0 %v2957_v41 }
0x1940   :  { %3297 = vmatpush3.msra.mxu0 %v2957_v41 }
0x1941   :  { %3298 = vmatprep.subr.mxu0 %v2956_v44 }
0x1942   :  { %3299 = vmatpush3.msra.mxu0 %v2956_v44 }
0x1943   :  { %3300 = vmatprep.subr.mxu0 %v2955_v36 }
0x1944   :  { %3301 = vmatpush3.msra.mxu0 %v2955_v36 }
0x1945   :  { %3302 = vmatprep.subr.mxu0 %v2954_v48 }
0x1946   :  { %3303 = vmatpush3.msra.mxu0 %v2954_v48 }
0x1947   :  { %3304 = vmatprep.subr.mxu0 %v2953_v49 }
0x1948   :  { %3305 = vmatpush3.msra.mxu0 %v2953_v49 }
0x1949   :  { %3306 = vmatprep.subr.mxu0 %v2952_v50 }
0x194a   :  { %3307 = vmatpush3.msra.mxu0 %v2952_v50 }
0x19fb   :  { %v3280_v45 = vpop.f32.mrf.mxu0 }
0x19fc   :  { %v2445_v43 = vadd.f32 %v3280_v45, %v2937_v56 }
0x19fd   :  { %v2439_v55 = vpop.f32.mrf.mxu0 }
0x19fe   :  { %v2449_v6 = vadd.f32 %v2445_v43, %v3855_v47  ;;  %v2440_v7 = vadd.f32 %v2937_v56, %v2439_v55 }
0x1a00   :  { %v2448_v54 = vadd.f32 %v2440_v7, %v3853_v46  ;;  %v2457_v8 = vsel %vm66_vm0, %v2449_v6, 0.0  ;;  %v2947_v46 = vld [vmem:[%s4116_s10 + $0x38] sm:$0xff] }
0x1a01   :  { %2458 = vadd.xlane.f32.xlu1 %v2457_v8  ;;  %3281 = vmatprep.subr.mxu1 %v2947_v46 }
0x1a02   :  { %v2454_v39 = vsel %vm66_vm0, %v2448_v54, 0.0  ;;  %3282 = vmatpush3.msra.mxu1 %v2947_v46 }
0x1a03   :  { %2455 = vadd.xlane.f32.xlu0 %v2454_v39  ;;  %3283 = vmatprep.subr.mxu1 %v2946_v17 }
0x1a04   :  { %3284 = vmatpush3.msra.mxu1 %v2946_v17 }
0x1a05   :  { %3285 = vmatprep.subr.mxu1 %v2945_v18 }
0x1a06   :  { %3286 = vmatpush3.msra.mxu1 %v2945_v18 }
0x1a07   :  { %3287 = vmatprep.subr.mxu1 %v2944_v19 }
0x1a08   :  { %3288 = vmatpush3.msra.mxu1 %v2944_v19 }
0x1a8a   :  { %v2459_v11 = vpop.xlane.xlu1 %2458 }
0x1a8b   :  { %v2461_v12 = vmul.f32 0.03125, %v2459_v11 }
0x1a8c   :  { %v2456_v13 = vpop.xlane.xlu0 %2455 }
0x1a8d   :  { %v2460_v14 = vmul.f32 0.03125, %v2456_v13  ;;  %v2463_v33 = vsub.f32 %v2449_v6, %v2461_v12 }
0x1a8f   :  { %v2462_v31 = vsub.f32 %v2448_v54, %v2460_v14  ;;  %v2465_v16 = vmul.f32 %v2463_v33, %v2463_v33  ;;  %v2961_v54 = vld [vmem:[%s4119_s13 + $0x1] ss:$0 sm:$0xff] }
0x1a91   :  { %v2464_v53 = vmul.f32 %v2462_v31, %v2462_v31  ;;  %v2469_v47 = vsel %vm66_vm0, %v2465_v16, 0.0 }
0x1a93   :  { %v2466_v15 = vsel %vm66_vm0, %v2464_v53, 0.0 }
0x1a94   :  { %2467 = vadd.xlane.f32.xlu0 %v2466_v15 }
0x1a98   :  { %2470 = vadd.xlane.f32.xlu0 %v2469_v47 }
0x1b1d   :  { %v2468_v20 = vpop.xlane.xlu0 %2467 }
0x1b1e   :  { %v2472_v21 = vmul.f32 0.03125, %v2468_v20 }
0x1b20   :  { %v2474_v22 = vadd.f32 1e-12, %v2472_v21 }
0x1b21   :  { %v2471_v23 = vpop.xlane.xlu0 %2470 }
0x1b22   :  { %3419 = vrsqrt.f32 %v2474_v22  ;;  %v2473_v24 = vmul.f32 0.03125, %v2471_v23  ;;  %v2757_v22 = vld [vmem:[%s4122_s16 + $0x18] sm:$0xff]  ;;  %v3469_v23 = vmov 0.0  }
0x1b23   :  { %3311 = vmatprep.subr.mxu1 %v3469_v23 }
0x1b24   :  { %v2475_v25 = vadd.f32 1e-12, %v2473_v24  ;;  %v2756_v24 = vld [vmem:[%s4122_s16 + $0x10] sm:$0xff] }
0x1b26   :  { %3421 = vrsqrt.f32 %v2475_v25  ;;  %v2755_v25 = vld [vmem:[%s4122_s16 + $0x8] sm:$0xff] }
0x1b2f   :  { %v3420_v26 = vpop.eup %3419 }
0x1b30   :  { %v2478_v38 = vmul.f32 %v3420_v26, %v2462_v31  ;;  %v2754_v26 = vld [vmem:[%s4122_s16] sm:$0xff] }
0x1b32   :  { %v2486_v29 = vmul.f32 %v2942_v27, %v2478_v38 }
0x1b33   :  { %v3422_v30 = vpop.eup %3421 }
0x1b34   :  { %v2479_v32 = vmul.f32 %v3422_v30, %v2463_v33  ;;  %v2494_v52 = vadd.f32 %v2943_v28, %v2486_v29 }
0x1b36   :  { %v2487_v34 = vmul.f32 %v2942_v27, %v2479_v32  ;;  %3289 = vmatprep.mubr.msk.f32.mxu1 %vm66_vm0, %v2494_v52 }
0x1b38   :  { %v2495_v35 = vadd.f32 %v2943_v28, %v2487_v34  ;;  %v2966_v34 = vld [vmem:[%s4120_s14 + $0x1] ss:$0 sm:$0xff]  ;;  %s3471_s14 = smov [#allocation2]  }
0x1b39   :  { %s2850_s21 = sshll.u32 %s3471_s14, 4  ;;  %s2851_s21 = int_to_ptr.vmem [resolvable:$true] %s2850_s21 }
0x1b3a   :  { %3290 = vmatmul.mubr.msk.f32.vlgmr.msra.gmra.mxu1 %vm66_vm0, %v2495_v35  ;;  %s3433_s15 = scalar_lea.vmem %s2851_s21, 32  ;;  %p3438_p1 = scmp.lt.s32.totalorder %s2851_s21, %s2851_s21 }
0x1b3b   :  { %3319 = vmatprep.mubr.msk.f32.mxu1 %vm3470_vm5, %v3469_v23  ;;  %3312 = vmatpush3.msra.mxu1 %v2757_v22  ;;  %p3434_p0 = scmp.ne.s32.totalorder %s2851_s21, %s3433_s15  ;;  %p3439_p2 = scmp.lt.s32.totalorder %s3433_s15, %s3433_s15 }
0x1b3c   :  { %3313 = vmatprep.subr.mxu1 %v3469_v23 }
0x1b3d   :  { %3314 = vmatpush3.msra.mxu1 %v2756_v24  ;;  %p3440_p3 = por %p3439_p2, %p3438_p1 }
0x1b3e   :  { %3315 = vmatprep.subr.mxu1 %v3469_v23 }
0x1b3f   :  { %3316 = vmatpush3.msra.mxu1 %v2755_v25  ;;  %p3441_p4 = pnand %p3440_p3, %p3434_p0 }
0x1b40   :  { %3317 = vmatprep.subr.mxu1 %v3469_v23 }
0x1b41   :  { %3318 = vmatpush3.msra.mxu1 %v2754_v26 }
0x1bfa   :  { %v3291_v57 = vpop.f32.mrf.mxu1 }
0x1bfb   :  { %v2587_v58 = vadd.f32 %v3291_v57, %v2949_v51  ;;  %v2968_v57 = vld [vmem:[%s4123_s17] ss:$0 sm:$0xff] }
0x1bfc   :  { %v2581_v59 = vpop.f32.mrf.mxu1 }
0x1bfd   :  { %v2593_v60 = vmul.f32 0.044715, %v2587_v58  ;;  %v2582_v61 = vadd.f32 %v2949_v51, %v2581_v59  ;;  %v2591_v55 = vmul.f32 0.5, %v2587_v58 }
0x1bff   :  { %v2595_v62 = vmul.f32 %v2593_v60, %v2587_v58  ;;  %v2592_v10 = vmul.f32 0.044715, %v2582_v61  ;;  %v2590_v45 = vmul.f32 0.5, %v2582_v61 }
0x1c01   :  { %v2597_v63 = vmul.f32 %v2595_v62, %v2587_v58  ;;  %v2594_v0 = vmul.f32 %v2592_v10, %v2582_v61 }
0x1c03   :  { %v2599_v9 = vadd.f32 %v2597_v63, %v2587_v58  ;;  %v2596_v42 = vmul.f32 %v2594_v0, %v2582_v61 }
0x1c05   :  { %v2601_v1 = vmul.f32 0.7978846, %v2599_v9  ;;  %v2598_v2 = vadd.f32 %v2596_v42, %v2582_v61 }
0x1c07   :  { %3423 = vtanh.f32 %v2601_v1  ;;  %v2600_v3 = vmul.f32 0.7978846, %v2598_v2 }
0x1c09   :  { %3425 = vtanh.f32 %v2600_v3 }
0x1c14   :  { %v3424_v4 = vpop.eup %3423 }
0x1c15   :  { %v2605_v56 = vadd.f32 1.0, %v3424_v4 }
0x1c16   :  { %v3426_v5 = vpop.eup %3425 }
0x1c17   :  { %v2604_v43 = vadd.f32 1.0, %v3426_v5  ;;  %v2607_v7 = vmul.f32 %v2605_v56, %v2591_v55 }
0x1c19   :  { %v2606_v6 = vmul.f32 %v2604_v43, %v2590_v45 }
0x1c1b   :  { %3308 = vmatprep.mubr.msk.f32.mxu0 %vm1300_vm4, %v2606_v6 }
0x1c1c   :  { %3309 = vmatmul.mubr.msk.f32.vlgmr.msra.gmra.mxu0 %vm1300_vm4, %v2607_v7 }
0x1cdc   :  { %v3310_v8 = vpop.f32.mrf.mxu0 }
0x1cdd   :  { %v2703_v39 = vadd.f32 %v3310_v8, %v2961_v54 }
0x1cde   :  { %v2697_v11 = vpop.f32.mrf.mxu0 }
0x1cdf   :  { %v2707_v12 = vadd.f32 %v2703_v39, %v2495_v35  ;;  %v2698_v13 = vadd.f32 %v2961_v54, %v2697_v11 }
0x1ce1   :  { %v2706_v14 = vadd.f32 %v2698_v13, %v2494_v52  ;;  %v2715_v33 = vsel %vm66_vm0, %v2707_v12, 0.0 }
0x1ce2   :  { %2716 = vadd.xlane.f32.xlu0 %v2715_v33 }
0x1ce3   :  { %v2712_v31 = vsel %vm66_vm0, %v2706_v14, 0.0 }
0x1ce4   :  { %2713 = vadd.xlane.f32.xlu1 %v2712_v31 }
0x1d6b   :  { %v2717_v53 = vpop.xlane.xlu0 %2716 }
0x1d6c   :  { %v2719_v15 = vmul.f32 0.03125, %v2717_v53 }
0x1d6d   :  { %v2714_v16 = vpop.xlane.xlu1 %2713 }
0x1d6e   :  { %v2721_v47 = vsub.f32 %v2707_v12, %v2719_v15  ;;  %v2718_v46 = vmul.f32 0.03125, %v2714_v16 }
0x1d70   :  { %v2720_v17 = vsub.f32 %v2706_v14, %v2718_v46  ;;  %v2723_v18 = vmul.f32 %v2721_v47, %v2721_v47 }
0x1d72   :  { %v2727_v19 = vsel %vm66_vm0, %v2723_v18, 0.0  ;;  %v2722_v20 = vmul.f32 %v2720_v17, %v2720_v17 }
0x1d73   :  { %2728 = vadd.xlane.f32.xlu0 %v2727_v19 }
0x1d74   :  { %v2724_v21 = vsel %vm66_vm0, %v2722_v20, 0.0 }
0x1d75   :  { %2725 = vadd.xlane.f32.xlu1 %v2724_v21 }
0x1dfc   :  { %v2729_v27 = vpop.xlane.xlu0 %2728 }
0x1dfd   :  { %v2731_v38 = vmul.f32 0.03125, %v2729_v27 }
0x1dfe   :  { %v2726_v28 = vpop.xlane.xlu1 %2725 }
0x1dff   :  { %v2733_v29 = vadd.f32 1e-12, %v2731_v38  ;;  %v2730_v30 = vmul.f32 0.03125, %v2726_v28 }
0x1e01   :  { %3427 = vrsqrt.f32 %v2733_v29  ;;  %v2732_v32 = vadd.f32 1e-12, %v2730_v30 }
0x1e03   :  { %3429 = vrsqrt.f32 %v2732_v32 }
0x1e0e   :  { %v3428_v52 = vpop.eup %3427 }
0x1e0f   :  { %v2737_v35 = vmul.f32 %v3428_v52, %v2721_v47 }
0x1e10   :  { %v3430_v37 = vpop.eup %3429 }
0x1e11   :  { %v2736_v41 = vmul.f32 %v3430_v37, %v2720_v17  ;;  %v2745_v44 = vmul.f32 %v2966_v34, %v2737_v35 }
0x1e13   :  { %v2744_v36 = vmul.f32 %v2966_v34, %v2736_v41  ;;  %v2753_v48 = vadd.f32 %v2967_v40, %v2745_v44 }
0x1e15   :  { %v2752_v49 = vadd.f32 %v2967_v40, %v2744_v36  ;;  %v2767_v50 = vrot.slane %v2753_v48, 7 }
0x1e17   :  { %v2769_v51 = vsel %vm2768_vm6, %v2767_v50, %v2752_v49 }
0x1e18   :  { %3320 = vmatmul.mubr.msk.f32.vlgmr.msra.gmra.mxu1 %vm66_vm0, %v2769_v51 }
0x1ed8   :  { %v2838_v58 = vpop.f32.mrf.mxu1 }
0x1ed9   :  { %v2839_v59 = vadd.f32 %v2968_v57, %v2838_v58 }
0x1eda   :  { %v3321_v60 = vpop.f32.mrf.mxu1 }
0x1edb   :  { %2843 = vst.msk [vmem:[#allocation2] sm:$0x3] %vm2842_vm7, %v2839_v59 }
0x1edc   :  { %3444 = shalt.err (!%p3441_p4)
}
0x1edd   :  { %2853 = dma.vmem_to_hbm [thread:$0]  %s2851_s21, 32, %s4124_s18, [#allocation3]  }
0x1ede   :  { %3453 = dma.done.wait [#allocation3], 32  }
0x1edf   :  { %3454 = vsyncadd [#allocation3], 4294967264 }
0x1ee0   :  { %2857 = vsyncpa [#allocation3], 1 }

</bundles_post_ra>
